<compile_context>
chip_gen: v7x
topology: tpu7x:2x2x1
jax: 0.10.0
libtpu: 0.0.40
codegen_flags: <defaults>
</compile_context>

<pallas_src>
import jax
import jax.numpy as jnp
from jax.experimental import pallas as pl
from jax.experimental.pallas import tpu as pltpu

BN_EPS = 1e-5
MXU_DTYPE = jnp.bfloat16   # bf16 operands / f32 accumulate (native MXU rate)


def _round_up(x, m):
    return (x + m - 1) // m * m


def _vmem_limit_bytes():
    """Generation-aware VMEM budget: ~40 MiB on v7x (64 MiB/TC), ~80 MiB on v5e/v6e."""
    cap = None
    try:
        cap = int(getattr(pltpu.get_tpu_info(), "vmem_capacity_bytes", 0)) or None
    except Exception:
        cap = None
    if cap is None:
        cap = 64 * 1024 * 1024          # conservative fallback (safe on every gen)
    return max(16 * 1024 * 1024, (cap * 5) // 8)


def _pick_row_tile(N, H, W, Cin, Cout, Cpad, vmem_limit):
    """Largest row tile th (divisor of H) whose pipelined VMEM footprint fits, while
    keeping at least 2 grid steps so a v7x megacore doesn't idle one TensorCore."""
    budget = (vmem_limit * 4) // 5       # headroom for compiler-internal scratch

    def tile_bytes(th):
        in_t = th * (W + 2) * 3 * Cin * 2      # xr bf16 tile   (x2: double-buffered)
        out_t = th * W * Cout * 4              # f32 output tile (x2: double-buffered)
        conv = th * W * Cpad * 4               # in-kernel f32 conv temp
        im2c = th * W * 9 * Cin * 2            # in-kernel bf16 im2col temp
        wts = 9 * Cin * Cpad * 2
        return 2 * in_t + 2 * out_t + conv + im2c + wts

    cands = [t for t in range(1, H + 1)
             if H % t == 0 and (t == H or (t * W) % 8 == 0)]
    fits = [t for t in cands if tile_bytes(t) <= budget]
    if not fits:
        # TODO(synk): pad/mask H so a sub-VMEM tile always exists for huge W*C shapes.
        fits = [min(cands)]
    multi = [t for t in fits if N * (H // t) >= 2]   # keep >=2 steps for 2-TC parts
    pool = multi if multi else fits
    return max(pool)


def _conv_tile(xr_ref, w_ref):
    """Shared conv tile: one K=9*Cin MXU matmul from a dy-stacked, W-padded tile."""
    x = xr_ref[0]                               # (th, W+2, 3*Cin) bf16
    th, wp2, k3 = x.shape
    w_out = wp2 - 2
    # im2col in VMEM: 3 static dx shifts, concatenated along K.
    lhs = jnp.concatenate(
        [x[:, dx:dx + w_out, :].reshape(th * w_out, k3) for dx in range(3)],
        axis=-1)                                # (th*W, 9*Cin) bf16
    return jnp.dot(lhs, w_ref[...], preferred_element_type=jnp.float32)  # (th*W, Cpad) f32


def conv_stats_kernel(xr_ref, w_ref, s1_ref, ssd_ref):
    """Pass 1: per-tile BN partials only (channel sum + mean-shifted sum of squares)."""
    conv = _conv_tile(xr_ref, w_ref)            # (th*W, Cpad) f32
    n_pix = conv.shape[0]
    s1 = jnp.sum(conv, axis=0, keepdims=True)   # (1, Cpad)
    mu = s1 * (1.0 / n_pix)
    d = conv - mu
    ssd = jnp.sum(d * d, axis=0, keepdims=True)
    s1_ref[0, 0] = s1                            # two separate writes, no concat
    ssd_ref[0, 0] = ssd


def conv_bn_relu_kernel(xr_ref, w_ref, scale_ref, shift_ref, out_ref):
    """Pass 2: recompute conv tile, folded BN affine (1 mul + 1 add) + ReLU,
    stored unpadded (last dim = Cout)."""
    conv = _conv_tile(xr_ref, w_ref)             # (th*W, Cpad) f32
    cout = out_ref.shape[-1]
    y = conv[:, :cout] * scale_ref[...] + shift_ref[...]
    out_ref[0] = jnp.maximum(y, 0.0).astype(out_ref.dtype)


@jax.jit
def layer_forward(x_nchw, w_oihw, gamma, beta):
    N, Cin, H, W = x_nchw.shape
    Cout = w_oihw.shape[0]
    Cpad = _round_up(Cout, 128)                 # MXU result width only; never hits HBM
    vmem_limit = _vmem_limit_bytes()
    th = _pick_row_tile(N, H, W, Cin, Cout, Cpad, vmem_limit)
    R = H // th
    grid = (N, R)

    # ---- glue: NHWC, replicate pad, stack the 3 dy shifts along channels ----
    x_nhwc = jnp.transpose(x_nchw, (0, 2, 3, 1))
    xp = jnp.pad(x_nhwc, ((0, 0), (1, 1), (1, 1), (0, 0)), mode="edge")
    xr = jnp.concatenate([xp[:, dy:dy + H, :, :] for dy in range(3)], axis=-1)
    xr = xr.astype(MXU_DTYPE)                   # (N, H, W+2, 3*Cin)

    # weights (Cout, Cin, 3, 3) -> (9*Cin, Cpad), K index = dx*3*Cin + dy*Cin + ci
    w9 = jnp.transpose(w_oihw, (3, 2, 1, 0)).reshape(9 * Cin, Cout)
    w9 = jnp.pad(w9, ((0, 0), (0, Cpad - Cout))).astype(MXU_DTYPE)

    cparams = pltpu.CompilerParams(
        dimension_semantics=("parallel", "parallel"),
        vmem_limit_bytes=vmem_limit)

    xr_spec = pl.BlockSpec((1, th, W + 2, 3 * Cin), lambda n, r: (n, r, 0, 0))
    w_spec = pl.BlockSpec((9 * Cin, Cpad), lambda n, r: (0, 0))

    # ---- pass 1: per-tile BN partial stats (no conv intermediate to HBM) ----
    s1, ssd = pl.pallas_call(
        conv_stats_kernel,
        out_shape=(jax.ShapeDtypeStruct((N, R, 1, Cpad), jnp.float32),
                   jax.ShapeDtypeStruct((N, R, 1, Cpad), jnp.float32)),
        grid_spec=pltpu.PrefetchScalarGridSpec(
            num_scalar_prefetch=0, grid=grid,
            in_specs=[xr_spec, w_spec],
            out_specs=(pl.BlockSpec((1, 1, 1, Cpad), lambda n, r: (n, r, 0, 0)),
                       pl.BlockSpec((1, 1, 1, Cpad), lambda n, r: (n, r, 0, 0)))),
        compiler_params=cparams,
    )(xr, w9)

    # ---- tiny O(R*Cout) glue: numerically-stable two-level BN stats combine ----
    M = N * H * W
    n_tile = th * W
    s1c = s1[..., :Cout]                         # (N, R, 1, Cout)
    ssdc = ssd[..., :Cout]
    mean = jnp.sum(s1c, axis=(0, 1, 2)) / M      # (Cout,)
    mu_t = s1c / n_tile
    total_ss = jnp.sum(ssdc, axis=(0, 1, 2)) \
        + n_tile * jnp.sum((mu_t - mean) ** 2, axis=(0, 1, 2))
    var = jnp.maximum(total_ss / M, 0.0)         # biased var (train-mode BN)
    scale = gamma.astype(jnp.float32) * jax.lax.rsqrt(var + BN_EPS)
    shift = beta.astype(jnp.float32) - mean * scale
    scale = scale.reshape(1, Cout)
    shift = shift.reshape(1, Cout)

    # ---- pass 2: recompute conv, y = conv*scale + shift, ReLU, unpadded store ----
    out_flat = pl.pallas_call(
        conv_bn_relu_kernel,
        out_shape=jax.ShapeDtypeStruct((N, H * W, Cout), jnp.float32),
        grid_spec=pltpu.PrefetchScalarGridSpec(
            num_scalar_prefetch=0, grid=grid,
            in_specs=[xr_spec, w_spec,
                      pl.BlockSpec((1, Cout), lambda n, r: (0, 0)),
                      pl.BlockSpec((1, Cout), lambda n, r: (0, 0))],
            out_specs=pl.BlockSpec((1, th * W, Cout), lambda n, r: (n, r, 0))),
        compiler_params=cparams,
    )(xr, w9, scale, shift)

    # Back to NCHW only to match the PyTorch contract; an NHWC consumer could take
    # out_flat directly and skip this transpose.
    out_nhwc = out_flat.reshape(N, H, W, Cout)
    return jnp.transpose(out_nhwc, (0, 3, 1, 2))
    # TODO(synk): PyTorch BatchNorm2d (training mode) also updates running_mean /
    # running_var buffers (with unbiased var); that module-state side effect is not
    # emitted here.


def layer_reference(x_nchw, w_oihw, gamma, beta):
    """Pure-JAX reference with the same bf16-operand / f32-accumulate conv."""
    N, Cin, H, W = x_nchw.shape
    Cout = w_oihw.shape[0]
    x_nhwc = jnp.transpose(x_nchw, (0, 2, 3, 1))
    xp = jnp.pad(x_nhwc, ((0, 0), (1, 1), (1, 1), (0, 0)), mode="edge").astype(MXU_DTYPE)
    w_hwio = jnp.transpose(w_oihw, (2, 3, 1, 0)).astype(MXU_DTYPE)
    conv = jax.lax.conv_general_dilated(
        xp, w_hwio, window_strides=(1, 1), padding="VALID",
        dimension_numbers=("NHWC", "HWIO", "NHWC"),
        preferred_element_type=jnp.float32)
    mean = jnp.mean(conv, axis=(0, 1, 2), keepdims=True)
    var = jnp.mean((conv - mean) ** 2, axis=(0, 1, 2), keepdims=True)
    y = (conv - mean) * jax.lax.rsqrt(var + BN_EPS) * gamma.reshape(1, 1, 1, Cout) \
        + beta.reshape(1, 1, 1, Cout)
    y = jnp.maximum(y, 0.0)
    return jnp.transpose(y, (0, 3, 1, 2))


if __name__ == "__main__":
    key = jax.random.PRNGKey(0)
    k_x, k_w, k_g, k_b = jax.random.split(key, 4)

    N, Cin, Cout, H, W = 2, 4, 8, 16, 16

    x = jax.random.normal(k_x, (N, Cin, H, W), dtype=jnp.float32)
    w = jax.random.normal(k_w, (Cout, Cin, 3, 3), dtype=jnp.float32) * 0.1
    gamma = 1.0 + 0.1 * jax.random.normal(k_g, (Cout,), dtype=jnp.float32)
    beta = 0.1 * jax.random.normal(k_b, (Cout,), dtype=jnp.float32)

    out = jax.block_until_ready(layer_forward(x, w, gamma, beta))
    ref = jax.block_until_ready(layer_reference(x, w, gamma, beta))

    assert out.shape == (N, Cout, H, W), out.shape
    max_diff = float(jnp.max(jnp.abs(out - ref)))
    assert jnp.allclose(out, ref, atol=1e-3, rtol=1e-3), max_diff

    print("KERNEL_OK")
</pallas_src>

<mosaic_0001>
module attributes {stable_mosaic.version = 11 : i64} {
  func.func @conv_stats_kernel(%arg0: i32, %arg1: i32, %arg2: memref<1x16x18x12xbf16, #tpu.memory_space<vmem>>, %arg3: memref<36x128xbf16, #tpu.memory_space<vmem>>, %arg4: memref<1x1x1x128xf32, #tpu.memory_space<vmem>>, %arg5: memref<1x1x1x128xf32, #tpu.memory_space<vmem>>) attributes {dimension_semantics = [#tpu.dimension_semantics<parallel>, #tpu.dimension_semantics<parallel>], iteration_bounds = array<i64: 2, 1>, scalar_prefetch = 0 : i64, scratch_operands = 0 : i64, tpu.core_type = #tpu.core_type<tc>, window_params = [{transform_indices = @transform_0, window_bounds = array<i64: 1, 16, 18, 12>}, {pipeline_mode = #tpu.pipeline_mode<synchronous>, transform_indices = @transform_1, window_bounds = array<i64: 36, 128>}, {transform_indices = @transform_2, window_bounds = array<i64: 1, 1, 1, 128>}, {transform_indices = @transform_3, window_bounds = array<i64: 1, 1, 1, 128>}]} {
    %c0 = arith.constant 0 : index
    %c0_0 = arith.constant 0 : index
    %c0_1 = arith.constant 0 : index
    %c0_2 = arith.constant 0 : index
    %0 = vector.load %arg2[%c0, %c0_0, %c0_1, %c0_2] : memref<1x16x18x12xbf16, #tpu.memory_space<vmem>>, vector<1x16x18x12xbf16>
    %1 = vector.shape_cast %0 : vector<1x16x18x12xbf16> to vector<16x18x12xbf16>
    %2 = vector.extract_strided_slice %1 {offsets = [0, 0, 0], sizes = [16, 16, 12], strides = [1, 1, 1]} : vector<16x18x12xbf16> to vector<16x16x12xbf16>
    %3 = vector.shape_cast %2 : vector<16x16x12xbf16> to vector<256x12xbf16>
    %4 = vector.extract_strided_slice %1 {offsets = [0, 1, 0], sizes = [16, 16, 12], strides = [1, 1, 1]} : vector<16x18x12xbf16> to vector<16x16x12xbf16>
    %5 = vector.shape_cast %4 : vector<16x16x12xbf16> to vector<256x12xbf16>
    %6 = vector.extract_strided_slice %1 {offsets = [0, 2, 0], sizes = [16, 16, 12], strides = [1, 1, 1]} : vector<16x18x12xbf16> to vector<16x16x12xbf16>
    %7 = vector.shape_cast %6 : vector<16x16x12xbf16> to vector<256x12xbf16>
    %8 = tpu.concatenate %3, %5, %7 in 1 : vector<256x12xbf16>, vector<256x12xbf16>, vector<256x12xbf16> -> vector<256x36xbf16>
    %c0_3 = arith.constant 0 : index
    %c0_4 = arith.constant 0 : index
    %9 = vector.load %arg3[%c0_3, %c0_4] : memref<36x128xbf16, #tpu.memory_space<vmem>>, vector<36x128xbf16>
    %cst = arith.constant dense<0.000000e+00> : vector<256x128xf32>
    %10 = tpu.matmul %8, %9, %cst {dimension_numbers = #tpu.dot_dimension_numbers<[1], [0], [0], [1], [0, 0, 1, 1], [], []>} : vector<256x36xbf16>, vector<36x128xbf16>, vector<256x128xf32> -> vector<256x128xf32>
    %cst_5 = arith.constant dense<0.000000e+00> : vector<128xf32>
    %11 = vector.multi_reduction <add>, %10, %cst_5 [0] : vector<256x128xf32> to vector<128xf32>
    %12 = vector.shape_cast %11 : vector<128xf32> to vector<1x128xf32>
    %cst_6 = arith.constant 3.906250e-03 : f32
    %13 = vector.broadcast %cst_6 : f32 to vector<1x128xf32>
    %14 = arith.mulf %12, %13 : vector<1x128xf32>
    %15 = vector.broadcast %14 : vector<1x128xf32> to vector<256x128xf32>
    %16 = arith.subf %10, %15 : vector<256x128xf32>
    %17 = arith.mulf %16, %16 : vector<256x128xf32>
    %cst_7 = arith.constant dense<0.000000e+00> : vector<128xf32>
    %18 = vector.multi_reduction <add>, %17, %cst_7 [0] : vector<256x128xf32> to vector<128xf32>
    %19 = vector.shape_cast %18 : vector<128xf32> to vector<1x128xf32>
    %c0_8 = arith.constant 0 : index
    %c0_9 = arith.constant 0 : index
    %c0_10 = arith.constant 0 : index
    %c0_11 = arith.constant 0 : index
    %20 = vector.load %arg4[%c0_8, %c0_9, %c0_10, %c0_11] : memref<1x1x1x128xf32, #tpu.memory_space<vmem>>, vector<1x1x1x128xf32>
    %21 = vector.shape_cast %20 : vector<1x1x1x128xf32> to vector<1x128xf32>
    %22 = vector.shape_cast %12 : vector<1x128xf32> to vector<1x1x1x128xf32>
    tpu.vector_store %arg4[%c0_8, %c0_9, %c0_10, %c0_11], %22 {strides = array<i32>} : memref<1x1x1x128xf32, #tpu.memory_space<vmem>>, vector<1x1x1x128xf32>,
    %c0_12 = arith.constant 0 : index
    %c0_13 = arith.constant 0 : index
    %c0_14 = arith.constant 0 : index
    %c0_15 = arith.constant 0 : index
    %23 = vector.load %arg5[%c0_12, %c0_13, %c0_14, %c0_15] : memref<1x1x1x128xf32, #tpu.memory_space<vmem>>, vector<1x1x1x128xf32>
    %24 = vector.shape_cast %23 : vector<1x1x1x128xf32> to vector<1x128xf32>
    %25 = vector.shape_cast %19 : vector<1x128xf32> to vector<1x1x1x128xf32>
    tpu.vector_store %arg5[%c0_12, %c0_13, %c0_14, %c0_15], %25 {strides = array<i32>} : memref<1x1x1x128xf32, #tpu.memory_space<vmem>>, vector<1x1x1x128xf32>,
    return
  }
  func.func @transform_0(%arg0: i32, %arg1: i32) -> (i32, i32, i32, i32) {
    %c0_i32 = arith.constant 0 : i32
    %c0_i32_0 = arith.constant 0 : i32
    %c0_i32_1 = arith.constant 0 : i32
    return %arg0, %arg1, %c0_i32, %c0_i32_0 : i32, i32, i32, i32
  }
  func.func @transform_1(%arg0: i32, %arg1: i32) -> (i32, i32) {
    %c0_i32 = arith.constant 0 : i32
    %c0_i32_0 = arith.constant 0 : i32
    %c0_i32_1 = arith.constant 0 : i32
    return %c0_i32, %c0_i32_0 : i32, i32
  }
  func.func @transform_2(%arg0: i32, %arg1: i32) -> (i32, i32, i32, i32) {
    %c0_i32 = arith.constant 0 : i32
    %c0_i32_0 = arith.constant 0 : i32
    %c0_i32_1 = arith.constant 0 : i32
    return %arg0, %arg1, %c0_i32, %c0_i32_0 : i32, i32, i32, i32
  }
  func.func @transform_3(%arg0: i32, %arg1: i32) -> (i32, i32, i32, i32) {
    %c0_i32 = arith.constant 0 : i32
    %c0_i32_0 = arith.constant 0 : i32
    %c0_i32_1 = arith.constant 0 : i32
    return %arg0, %arg1, %c0_i32, %c0_i32_0 : i32, i32, i32, i32
  }
}

module attributes {stable_mosaic.version = 11 : i64} {
  func.func @conv_bn_relu_kernel(%arg0: i32, %arg1: i32, %arg2: memref<1x16x18x12xbf16, #tpu.memory_space<vmem>>, %arg3: memref<36x128xbf16, #tpu.memory_space<vmem>>, %arg4: memref<1x8xf32, #tpu.memory_space<vmem>>, %arg5: memref<1x8xf32, #tpu.memory_space<vmem>>, %arg6: memref<1x256x8xf32, #tpu.memory_space<vmem>>) attributes {dimension_semantics = [#tpu.dimension_semantics<parallel>, #tpu.dimension_semantics<parallel>], iteration_bounds = array<i64: 2, 1>, scalar_prefetch = 0 : i64, scratch_operands = 0 : i64, tpu.core_type = #tpu.core_type<tc>, window_params = [{transform_indices = @transform_0, window_bounds = array<i64: 1, 16, 18, 12>}, {pipeline_mode = #tpu.pipeline_mode<synchronous>, transform_indices = @transform_1, window_bounds = array<i64: 36, 128>}, {pipeline_mode = #tpu.pipeline_mode<synchronous>, transform_indices = @transform_2, window_bounds = array<i64: 1, 8>}, {pipeline_mode = #tpu.pipeline_mode<synchronous>, transform_indices = @transform_3, window_bounds = array<i64: 1, 8>}, {transform_indices = @transform_4, window_bounds = array<i64: 1, 256, 8>}]} {
    %c0 = arith.constant 0 : index
    %c0_0 = arith.constant 0 : index
    %c0_1 = arith.constant 0 : index
    %c0_2 = arith.constant 0 : index
    %0 = vector.load %arg2[%c0, %c0_0, %c0_1, %c0_2] : memref<1x16x18x12xbf16, #tpu.memory_space<vmem>>, vector<1x16x18x12xbf16>
    %1 = vector.shape_cast %0 : vector<1x16x18x12xbf16> to vector<16x18x12xbf16>
    %2 = vector.extract_strided_slice %1 {offsets = [0, 0, 0], sizes = [16, 16, 12], strides = [1, 1, 1]} : vector<16x18x12xbf16> to vector<16x16x12xbf16>
    %3 = vector.shape_cast %2 : vector<16x16x12xbf16> to vector<256x12xbf16>
    %4 = vector.extract_strided_slice %1 {offsets = [0, 1, 0], sizes = [16, 16, 12], strides = [1, 1, 1]} : vector<16x18x12xbf16> to vector<16x16x12xbf16>
    %5 = vector.shape_cast %4 : vector<16x16x12xbf16> to vector<256x12xbf16>
    %6 = vector.extract_strided_slice %1 {offsets = [0, 2, 0], sizes = [16, 16, 12], strides = [1, 1, 1]} : vector<16x18x12xbf16> to vector<16x16x12xbf16>
    %7 = vector.shape_cast %6 : vector<16x16x12xbf16> to vector<256x12xbf16>
    %8 = tpu.concatenate %3, %5, %7 in 1 : vector<256x12xbf16>, vector<256x12xbf16>, vector<256x12xbf16> -> vector<256x36xbf16>
    %c0_3 = arith.constant 0 : index
    %c0_4 = arith.constant 0 : index
    %9 = vector.load %arg3[%c0_3, %c0_4] : memref<36x128xbf16, #tpu.memory_space<vmem>>, vector<36x128xbf16>
    %cst = arith.constant dense<0.000000e+00> : vector<256x128xf32>
    %10 = tpu.matmul %8, %9, %cst {dimension_numbers = #tpu.dot_dimension_numbers<[1], [0], [0], [1], [0, 0, 1, 1], [], []>} : vector<256x36xbf16>, vector<36x128xbf16>, vector<256x128xf32> -> vector<256x128xf32>
    %11 = vector.extract_strided_slice %10 {offsets = [0, 0], sizes = [256, 8], strides = [1, 1]} : vector<256x128xf32> to vector<256x8xf32>
    %c0_5 = arith.constant 0 : index
    %c0_6 = arith.constant 0 : index
    %12 = vector.load %arg4[%c0_5, %c0_6] : memref<1x8xf32, #tpu.memory_space<vmem>>, vector<1x8xf32>
    %13 = vector.broadcast %12 : vector<1x8xf32> to vector<256x8xf32>
    %14 = arith.mulf %11, %13 : vector<256x8xf32>
    %c0_7 = arith.constant 0 : index
    %c0_8 = arith.constant 0 : index
    %15 = vector.load %arg5[%c0_7, %c0_8] : memref<1x8xf32, #tpu.memory_space<vmem>>, vector<1x8xf32>
    %16 = vector.broadcast %15 : vector<1x8xf32> to vector<256x8xf32>
    %17 = arith.addf %14, %16 : vector<256x8xf32>
    %cst_9 = arith.constant 0.000000e+00 : f32
    %18 = vector.broadcast %cst_9 : f32 to vector<256x8xf32>
    %19 = arith.maximumf %17, %18 : vector<256x8xf32>
    %c0_10 = arith.constant 0 : index
    %c0_11 = arith.constant 0 : index
    %c0_12 = arith.constant 0 : index
    %20 = vector.load %arg6[%c0_10, %c0_11, %c0_12] : memref<1x256x8xf32, #tpu.memory_space<vmem>>, vector<1x256x8xf32>
    %21 = vector.shape_cast %20 : vector<1x256x8xf32> to vector<256x8xf32>
    %22 = vector.shape_cast %19 : vector<256x8xf32> to vector<1x256x8xf32>
    tpu.vector_store %arg6[%c0_10, %c0_11, %c0_12], %22 {strides = array<i32>} : memref<1x256x8xf32, #tpu.memory_space<vmem>>, vector<1x256x8xf32>,
    return
  }
  func.func @transform_0(%arg0: i32, %arg1: i32) -> (i32, i32, i32, i32) {
    %c0_i32 = arith.constant 0 : i32
    %c0_i32_0 = arith.constant 0 : i32
    %c0_i32_1 = arith.constant 0 : i32
    return %arg0, %arg1, %c0_i32, %c0_i32_0 : i32, i32, i32, i32
  }
  func.func @transform_1(%arg0: i32, %arg1: i32) -> (i32, i32) {
    %c0_i32 = arith.constant 0 : i32
    %c0_i32_0 = arith.constant 0 : i32
    %c0_i32_1 = arith.constant 0 : i32
    return %c0_i32, %c0_i32_0 : i32, i32
  }
  func.func @transform_2(%arg0: i32, %arg1: i32) -> (i32, i32) {
    %c0_i32 = arith.constant 0 : i32
    %c0_i32_0 = arith.constant 0 : i32
    %c0_i32_1 = arith.constant 0 : i32
    return %c0_i32, %c0_i32_0 : i32, i32
  }
  func.func @transform_3(%arg0: i32, %arg1: i32) -> (i32, i32) {
    %c0_i32 = arith.constant 0 : i32
    %c0_i32_0 = arith.constant 0 : i32
    %c0_i32_1 = arith.constant 0 : i32
    return %c0_i32, %c0_i32_0 : i32, i32
  }
  func.func @transform_4(%arg0: i32, %arg1: i32) -> (i32, i32, i32) {
    %c0_i32 = arith.constant 0 : i32
    %c0_i32_0 = arith.constant 0 : i32
    return %arg0, %arg1, %c0_i32 : i32, i32, i32
  }
}

</mosaic_0001>

<bundles_post_ra>
// kernel: layer_forward.3
= control target key start
LH: loop header
LB: loop body
LE: loop exit
PB: predicated region body
PF: predicated region fallthrough
CT: control target
= control target key end

     0   :  { %s1838_s15 = smov 0   ;;  %s1840_s16 = smov 0   ;;  %s2562_s0 = inlined_call_operand.vmem [shape: bf16[2,16,18,12], index: 0, kind: input, shape index: {}]   ;;  %s2563_s1 = inlined_call_operand.vmem [shape: bf16[36,128], index: 1, kind: input, shape index: {}]   ;;  %s2564_s2 = inlined_call_operand.vmem [shape: f32[1,8], index: 2, kind: input, shape index: {}]   ;;  %s2565_s3 = inlined_call_operand.vmem [shape: f32[1,8], index: 3, kind: input, shape index: {}]   ;;  %s2566_s4 = inlined_call_operand.vmem [shape: f32[2,256,8], index: 4, kind: output, shape index: {}]  }
   0x1   :  { %s1842_s17 = smov 0  }
   0x2 LB: > { %s26_s18 = sadd.s32 1, %s1805_s16  ;;  %p1584_p0 = scmp.ge.s32.totalorder %s1809_s17, 1  ;;  %s1809_s17 = sphi %s1842_s17, %s14_s17   ;;  %s1805_s16 = sphi %s1840_s16, %s2572_s16   ;;  %s1801_s15 = sphi %s1838_s15, %s2571_s15  }
   0x3   : > { %p28_p1 = scmp.ge.s32.totalorder %s26_s18, 2  ;;  %p184_p2 = scmp.lt.s32.totalorder %s1809_s17, 3 }
   0x5   : > { %s2574_s18 = smov (%p28_p1, %s26_s18), 0  ;;  %p185_p3 = pnand %p1584_p0, %p184_p2 }
   0x6   : > { %p220_p4 = scmp.lt.s32.totalorder (!%p185_p3), %s1801_s15, 1  ;;  %v1768_v0 = vld [vmem:[%s2563_s1] sm:$0xff] (!%p185_p3)   ;;  %vm724_vm0 = vcmask (!%p185_p3), 1042432   ;;  %vm725_vm1 = vcmask (!%p185_p3), 1046532   ;;  %v1769_v1 = vld [vmem:[%s2563_s1 + $0x8] sm:$0xff] (!%p185_p3)   ;;  %s1811_s27 = smov (!%p185_p3), 24  }
   0x7   : > { %188 = sbr.rel (%p185_p3) target bundleno = 462 (0x1ce), region = 36  ;;  %1695 = vmatprep.subr.bf16.mxu0 (!%p185_p3), %v1768_v0  ;;  %1733 = vmatprep.subr.bf16.mxu1 (!%p185_p3), %v1768_v0  ;;  %vm1870_vm2 = vmor (!%p185_p3), %vm724_vm0, %vm725_vm1  ;;  %vm289_vm3 = vsmask.f32 (!%p185_p3), 3328  ;;  %vm290_vm4 = vsmask.f32 (!%p185_p3), 7440  ;;  %s1812_s28 = smov (!%p185_p3), 12  }
   0x8   : > { %1696 = vmatpush3.bf16.msra.mxu0 (!%p185_p3), %v1768_v0  ;;  %1736 = vmatpush3.bf16.msra.mxu1 (!%p185_p3), %v1768_v0  ;;  %vm1947_vm5 = vmor (!%p185_p3), %vm289_vm3, %vm290_vm4  ;;  %vm1182_vm6 = vcmask (!%p185_p3), 1041408   ;;  %vm1047_vm7 = vcmask (!%p185_p3), 97280   ;;  %vm1096_vm8 = vcmask (!%p185_p3), 195584   ;;  %vm1149_vm9 = vcmask (!%p185_p3), 293888  }
   0x9   : > { %1697 = vmatprep.subr.bf16.mxu0 (!%p185_p3), %v1769_v1  ;;  %1734 = vmatprep.subr.bf16.mxu1 (!%p185_p3), %v1769_v1  ;;  %vm1457_vm10 = vcmask (!%p185_p3), 64512  }
   0xc   : > { %1698 = vmatpush3.bf16.msra.mxu0 (!%p185_p3), %v1769_v1  ;;  %1737 = vmatpush3.bf16.msra.mxu1 (!%p185_p3), %v1769_v1 }
   0xe   : > { %s2576_s15 = smov (!%p220_p4, %s1801_s15), 1 }
   0xf   : > { %s1741_s23 = smul.u32 192, %s2576_s15  ;;  %s1675_s9 = sshll.u32 %s2576_s15, 8 }
  0x10   : > { %s2427_s12 = scalar_lea.vmem %s2566_s4, %s1675_s9 }
  0x11   : > { %s1868_s26 = scalar_lea.vmem %s2562_s0, %s1741_s23 }
  0x12   : > { %v1875_v3 = vld [vmem:[%s1868_s26 + $0x60] sm:$0xf]  ;;  %v1878_v4 = vld [vmem:[%s1868_s26 + $0x64] sm:$0xf]  ;;  %v1881_v5 = vld [vmem:[%s1868_s26 + $0x68] sm:$0x1] }
  0x13   : > { %v504_v6 = vshll.u32 %v1881_v5, 16  ;;  %v1596_v7 = vrot.slane %v1875_v3, 9  ;;  %v785_v8 = vrot.slane %v1878_v4, 5  ;;  %v788_v9 = vrot.slane %v1881_v5, 5  ;;  %v1888_v10 = vld [vmem:[%s1868_s26] sm:$0xf] }
  0x14   : > { %v1891_v11 = vld [vmem:[%s1868_s26 + $0x4] sm:$0xf]  ;;  %v243_v12 = vld [vmem:[%s1868_s26 + $0x8] sm:$0x1]  ;;  %v1588_v13 = vrot.slane %v1888_v10, 9  ;;  %v293_v14 = vshrl.u32 %v1888_v10, 16 }
  0x15   : > { %v786_v15 = vsel %vm1870_vm2, %v1596_v7, %v785_v8  ;;  %v787_v16 = vrot.slane %v785_v8, 4  ;;  %v312_v17 = vshll.u32 %v243_v12, 16  ;;  %v729_v18 = vrot.slane %v1891_v11, 5  ;;  %v1900_v19 = vld [vmem:[%s1868_s26 + $0x6c] sm:$0xf] }
  0x16   : > { %v732_v20 = vrot.slane %v243_v12, 5  ;;  %v1903_v21 = vld [vmem:[%s1868_s26 + $0x70] sm:$0xf]  ;;  %v1906_v22 = vld [vmem:[%s1868_s26 + $0x74] sm:$0x1]  ;;  %v1597_v23 = vrot.slane %v1900_v19, 9 }
  0x17   : > { %v789_v24 = vsel %vm1870_vm2, %v787_v16, %v788_v9  ;;  %v730_v25 = vsel %vm1870_vm2, %v1588_v13, %v729_v18  ;;  %v731_v26 = vrot.slane %v729_v18, 4  ;;  %v792_v27 = vrot.slane %v1903_v21, 5  ;;  %v1915_v28 = vld [vmem:[%s1868_s26 + $0xc] sm:$0xf]  ;;  %v1918_v29 = vld [vmem:[%s1868_s26 + $0x10] sm:$0xf] }
  0x18   : > { %v1644_v30 = vcombine.low %v786_v15, %v789_v24  ;;  %v795_v31 = vrot.slane %v1906_v22, 5  ;;  %v246_v32 = vld [vmem:[%s1868_s26 + $0x14] sm:$0x1]  ;;  %v1589_v33 = vrot.slane %v1915_v28, 9  ;;  %v736_v34 = vrot.slane %v1918_v29, 5 }
  0x19   : > { %v733_v35 = vsel %vm1870_vm2, %v731_v26, %v732_v20  ;;  %v793_v36 = vsel %vm1870_vm2, %v1597_v23, %v792_v27  ;;  %v794_v37 = vrot.slane %v792_v27, 4  ;;  %v739_v38 = vrot.slane %v246_v32, 5 }
  0x1a   : > { %1031 = vrot.lane.b32.xlu1 %v1644_v30, %s1811_s27  ;;  %v1636_v39 = vcombine.low %v730_v25, %v733_v35  ;;  %v737_v40 = vsel %vm1870_vm2, %v1589_v33, %v736_v34  ;;  %v738_v41 = vrot.slane %v736_v34, 4  ;;  %v317_v42 = vshrl.u32 %v1915_v28, 16 }
  0x1b   : > { %v796_v43 = vsel %vm1870_vm2, %v794_v37, %v795_v31  ;;  %v320_v44 = vshll.u32 %v1915_v28, 16  ;;  %v326_v45 = vshll.u32 %v1918_v29, 16  ;;  %v330_v46 = vshrl.u32 %v1918_v29, 16 }
  0x1c   : > { %1015 = vrot.lane.b32.xlu0 %v1636_v39, %s1811_s27  ;;  %v1645_v47 = vcombine.low %v793_v36, %v796_v43  ;;  %v740_v48 = vsel %vm1870_vm2, %v738_v41, %v739_v38  ;;  %v319_v49 = vrot.slane %v317_v42, 4  ;;  %v336_v50 = vshll.u32 %v246_v32, 16 }
  0x1d   : > { %v1637_v51 = vcombine.low %v737_v40, %v740_v48  ;;  %v322_v52 = vrot.slane %v320_v44, 5  ;;  %v328_v53 = vrot.slane %v326_v45, 5  ;;  %v332_v54 = vrot.slane %v330_v46, 4  ;;  %v1967_v40 = vld [vmem:[%s1868_s26 + $0x78] sm:$0xf] }
  0x1e   : > { %1033 = vrot.lane.b32.xlu1 %v1645_v47, %s1811_s27  ;;  %v338_v55 = vrot.slane %v336_v50, 5  ;;  %v295_v56 = vrot.slane %v293_v14, 4  ;;  %v296_v57 = vshll.u32 %v1888_v10, 16  ;;  %v302_v58 = vshll.u32 %v1891_v11, 16  ;;  %v1972_v44 = vld [vmem:[%s1868_s26 + $0x7c] sm:$0xf] }
  0x1f   : > { %v323_v59 = vor.u32 %v322_v52, %v319_v49  ;;  %v333_v60 = vor.u32 %v332_v54, %v328_v53  ;;  %v306_v61 = vshrl.u32 %v1891_v11, 16  ;;  %v314_v62 = vrot.slane %v312_v17, 5  ;;  %v1980_v52 = vld [vmem:[%s1868_s26 + $0x80] sm:$0x1] }
  0x20   : > { %1017 = vrot.lane.b32.xlu0 %v1637_v51, %s1811_s27  ;;  %v298_v0 = vrot.slane %v296_v57, 5  ;;  %v304_v1 = vrot.slane %v302_v58, 5  ;;  %v509_v7 = vshrl.u32 %v1900_v19, 16  ;;  %v512_v8 = vshll.u32 %v1900_v19, 16  ;;  %v1990_v58 = vld [vmem:[%s1868_s26 + $0x18] sm:$0xf] }
  0x21   : > { %v324_v9 = vrot.slane %v323_v59, 4  ;;  %v334_v12 = vrot.slane %v333_v60, 4  ;;  %v308_v13 = vrot.slane %v306_v61, 4  ;;  %v518_v14 = vshll.u32 %v1903_v21, 16  ;;  %v1993_v61 = vld [vmem:[%s1868_s26 + $0x1c] sm:$0xf] }
  0x22   : > { %v299_v15 = vor.u32 %v298_v0, %v295_v56  ;;  %v511_v16 = vrot.slane %v509_v7, 4  ;;  %v514_v17 = vrot.slane %v512_v8, 5  ;;  %v522_v18 = vshrl.u32 %v1903_v21, 16 }
  0x23   : > { %v329_v20 = vsel %vm1947_vm5, %v324_v9, %v328_v53  ;;  %v339_v23 = vsel %vm1947_vm5, %v334_v12, %v338_v55  ;;  %v309_v24 = vor.u32 %v308_v13, %v304_v1  ;;  %v520_v25 = vrot.slane %v518_v14, 5  ;;  %v2000_v12 = vld [vmem:[%s1868_s26 + $0x20] sm:$0x1] }
  0x24   : > { %v1621_v26 = vcombine.low %v329_v20, %v339_v23  ;;  %v300_v27 = vrot.slane %v299_v15, 4  ;;  %v515_v30 = vor.u32 %v514_v17, %v511_v16  ;;  %v524_v31 = vrot.slane %v522_v18, 4  ;;  %v2006_v20 = vld [vmem:[%s1868_s26 + $0x84] sm:$0xf] }
  0x25   : > { %v310_v32 = vrot.slane %v309_v24, 4  ;;  %v528_v33 = vshll.u32 %v1906_v22, 16  ;;  %v485_v34 = vshrl.u32 %v1875_v3, 16  ;;  %v488_v35 = vshll.u32 %v1875_v3, 16 }
  0x26   : > { %937 = vrot.lane.b32.xlu1 %v1621_v26, %s1812_s28  ;;  %v305_v36 = vsel %vm1947_vm5, %v300_v27, %v304_v1  ;;  %v516_v37 = vrot.slane %v515_v30, 4  ;;  %v525_v38 = vor.u32 %v524_v31, %v520_v25  ;;  %v494_v39 = vshll.u32 %v1878_v4, 16 }
  0x27   : > { %v315_v22 = vsel %vm1947_vm5, %v310_v32, %v314_v62  ;;  %v530_v41 = vrot.slane %v528_v33, 5  ;;  %v487_v42 = vrot.slane %v485_v34, 4  ;;  %v490_v43 = vrot.slane %v488_v35, 5 }
  0x28   : > { %v1620_v45 = vcombine.low %v305_v36, %v315_v22  ;;  %v521_v46 = vsel %vm1947_vm5, %v516_v37, %v520_v25  ;;  %v526_v47 = vrot.slane %v525_v38, 4  ;;  %v496_v48 = vrot.slane %v494_v39, 5  ;;  %v2013_v36 = vld [vmem:[%s1868_s26 + $0x88] sm:$0xf]  ;;  %v2016_v37 = vld [vmem:[%s1868_s26 + $0x8c] sm:$0x1] }
  0x29   : > { %v491_v49 = vor.u32 %v490_v43, %v487_v42  ;;  %v498_v50 = vshrl.u32 %v1878_v4, 16  ;;  %v506_v51 = vrot.slane %v504_v6, 5  ;;  %v533_v53 = vshrl.u32 %v1967_v40, 16  ;;  %v2024_v43 = vld [vmem:[%s1868_s26 + $0x24] sm:$0xf] }
  0x2a   : > { %935 = vrot.lane.b32.xlu0 %v1620_v45, %s1812_s28  ;;  %v531_v54 = vsel %vm1947_vm5, %v526_v47, %v530_v41  ;;  %v536_v55 = vshll.u32 %v1967_v40, 16  ;;  %v542_v56 = vshll.u32 %v1972_v44, 16  ;;  %v546_v57 = vshrl.u32 %v1972_v44, 16 }
  0x2b   : > { %v1629_v5 = vcombine.low %v521_v46, %v531_v54  ;;  %v492_v6 = vrot.slane %v491_v49, 4  ;;  %v500_v59 = vrot.slane %v498_v50, 4  ;;  %v535_v60 = vrot.slane %v533_v53, 4  ;;  %v2032_v54 = vld [vmem:[%s1868_s26 + $0x28] sm:$0xf] }
  0x2c   : > { %v538_v62 = vrot.slane %v536_v55, 5  ;;  %v544_v0 = vrot.slane %v542_v56, 5  ;;  %v548_v1 = vrot.slane %v546_v57, 4  ;;  %v552_v7 = vshll.u32 %v1980_v52, 16 }
  0x2d   : > { %953 = vrot.lane.b32.xlu1 %v1629_v5, %s1812_s28  ;;  %v497_v8 = vsel %vm1947_vm5, %v492_v6, %v496_v48  ;;  %v501_v9 = vor.u32 %v500_v59, %v496_v48  ;;  %v341_v13 = vshrl.u32 %v1990_v58, 16  ;;  %v344_v14 = vshll.u32 %v1990_v58, 16 }
  0x2e   : > { %v539_v15 = vor.u32 %v538_v62, %v535_v60  ;;  %v549_v16 = vor.u32 %v548_v1, %v544_v0  ;;  %v554_v17 = vrot.slane %v552_v7, 5  ;;  %v350_v18 = vshll.u32 %v1993_v61, 16 }
  0x2f   : > { %v502_v23 = vrot.slane %v501_v9, 4  ;;  %v343_v24 = vrot.slane %v341_v13, 4  ;;  %v346_v25 = vrot.slane %v344_v14, 5  ;;  %v354_v26 = vshrl.u32 %v1993_v61, 16 }
  0x30   : > { %v540_v27 = vrot.slane %v539_v15, 4  ;;  %v550_v30 = vrot.slane %v549_v16, 4  ;;  %v352_v31 = vrot.slane %v350_v18, 5  ;;  %v360_v32 = vshll.u32 %v2000_v12, 16 }
  0x31   : > { %v507_v33 = vsel %vm1947_vm5, %v502_v23, %v506_v51  ;;  %v347_v34 = vor.u32 %v346_v25, %v343_v24  ;;  %v356_v35 = vrot.slane %v354_v26, 4  ;;  %v557_v38 = vshrl.u32 %v2006_v20, 16 }
  0x32   : > { %v1628_v39 = vcombine.low %v497_v8, %v507_v33  ;;  %v545_v22 = vsel %vm1947_vm5, %v540_v27, %v544_v0  ;;  %v555_v41 = vsel %vm1947_vm5, %v550_v30, %v554_v17  ;;  %v362_v42 = vrot.slane %v360_v32, 5  ;;  %v2040_v0 = vld [vmem:[%s1868_s26 + $0x2c] sm:$0x1] }
  0x33   : > { %v1630_v45 = vcombine.low %v545_v22, %v555_v41  ;;  %v348_v46 = vrot.slane %v347_v34, 4  ;;  %v357_v47 = vor.u32 %v356_v35, %v352_v31  ;;  %v559_v48 = vrot.slane %v557_v38, 4 }
  0x34   : > { %951 = vrot.lane.b32.xlu0 %v1628_v39, %s1812_s28  ;;  %v560_v49 = vshll.u32 %v2006_v20, 16  ;;  %v566_v50 = vshll.u32 %v2013_v36, 16  ;;  %v570_v51 = vshrl.u32 %v2013_v36, 16  ;;  %v576_v53 = vshll.u32 %v2016_v37, 16 }
  0x35   : > { %955 = vrot.lane.b32.xlu1 %v1630_v45, %s1812_s28  ;;  %v353_v55 = vsel %vm1947_vm5, %v348_v46, %v352_v31  ;;  %v358_v56 = vrot.slane %v357_v47, 4  ;;  %v365_v57 = vshrl.u32 %v2024_v43, 16  ;;  %v368_v5 = vshll.u32 %v2024_v43, 16 }
  0x36   : > { %v562_v6 = vrot.slane %v560_v49, 5  ;;  %v568_v59 = vrot.slane %v566_v50, 5  ;;  %v572_v60 = vrot.slane %v570_v51, 4  ;;  %v578_v62 = vrot.slane %v576_v53, 5 }
  0x37   : > { %v363_v1 = vsel %vm1947_vm5, %v358_v56, %v362_v42  ;;  %v367_v7 = vrot.slane %v365_v57, 4  ;;  %v370_v8 = vrot.slane %v368_v5, 5  ;;  %v374_v9 = vshll.u32 %v2032_v54, 16  ;;  %v2071_v56 = vld [vmem:[%s1868_s26 + $0x90] sm:$0xf] }
  0x38   : > { %v1622_v13 = vcombine.low %v353_v55, %v363_v1  ;;  %v563_v14 = vor.u32 %v562_v6, %v559_v48  ;;  %v573_v15 = vor.u32 %v572_v60, %v568_v59  ;;  %v378_v16 = vshrl.u32 %v2032_v54, 16  ;;  %v2082_v1 = vld [vmem:[%s1868_s26 + $0x94] sm:$0xf] }
  0x39   : > { %v371_v17 = vor.u32 %v370_v8, %v367_v7  ;;  %v376_v18 = vrot.slane %v374_v9, 5  ;;  %v384_v23 = vshll.u32 %v2040_v0, 16  ;;  %v1598_v24 = vrot.slane %v1967_v40, 9  ;;  %v2085_v7 = vld [vmem:[%s1868_s26 + $0x98] sm:$0x1] }
  0x3a   : > { %939 = vrot.lane.b32.xlu0 %v1622_v13, %s1812_s28  ;;  %v564_v25 = vrot.slane %v563_v14, 4  ;;  %v574_v26 = vrot.slane %v573_v15, 4  ;;  %v380_v27 = vrot.slane %v378_v16, 4  ;;  %v799_v30 = vrot.slane %v1972_v44, 5  ;;  %v2092_v15 = vld [vmem:[%s1868_s26 + $0x30] sm:$0xf] }
  0x3b   : > { %v372_v31 = vrot.slane %v371_v17, 4  ;;  %v386_v32 = vrot.slane %v384_v23, 5  ;;  %v802_v33 = vrot.slane %v1980_v52, 5  ;;  %v1590_v34 = vrot.slane %v1990_v58, 9 }
  0x3c   : > { %v569_v35 = vsel %vm1947_vm5, %v564_v25, %v568_v59  ;;  %v579_v38 = vsel %vm1947_vm5, %v574_v26, %v578_v62  ;;  %v381_v39 = vor.u32 %v380_v27, %v376_v18  ;;  %v800_v22 = vsel %vm1870_vm2, %v1598_v24, %v799_v30  ;;  %v2100_v24 = vld [vmem:[%s1868_s26 + $0x34] sm:$0xf] }
  0x3d   : > { %v1631_v41 = vcombine.low %v569_v35, %v579_v38  ;;  %v377_v42 = vsel %vm1947_vm5, %v372_v31, %v376_v18  ;;  %v801_v45 = vrot.slane %v799_v30, 4  ;;  %v743_v52 = vrot.slane %v1993_v61, 5  ;;  %v2106_v30 = vld [vmem:[%s1868_s26 + $0x38] sm:$0x1]  ;;  %v2113_v35 = vld [vmem:[%s1868_s26 + $0x9c] sm:$0xf] }
  0x3e   : > { %v382_v46 = vrot.slane %v381_v39, 4  ;;  %v746_v47 = vrot.slane %v2000_v12, 5  ;;  %v1599_v48 = vrot.slane %v2006_v20, 9  ;;  %v806_v49 = vrot.slane %v2013_v36, 5 }
  0x3f   : > { %957 = vrot.lane.b32.xlu1 %v1631_v41, %s1812_s28  ;;  %v803_v50 = vsel %vm1870_vm2, %v801_v45, %v802_v33  ;;  %v744_v51 = vsel %vm1870_vm2, %v1590_v34, %v743_v52  ;;  %v745_v53 = vrot.slane %v743_v52, 4  ;;  %v809_v55 = vrot.slane %v2016_v37, 5 }
  0x40   : > { %v387_v12 = vsel %vm1947_vm5, %v382_v46, %v386_v32  ;;  %v1646_v57 = vcombine.low %v800_v22, %v803_v50  ;;  %v807_v5 = vsel %vm1870_vm2, %v1599_v48, %v806_v49  ;;  %v808_v6 = vrot.slane %v806_v49, 4  ;;  %v2121_v50 = vld [vmem:[%s1868_s26 + $0xa0] sm:$0xf] }
  0x41   : > { %v1623_v59 = vcombine.low %v377_v42, %v387_v12  ;;  %v747_v60 = vsel %vm1870_vm2, %v745_v53, %v746_v47  ;;  %v1591_v62 = vrot.slane %v2024_v43, 9  ;;  %v750_v37 = vrot.slane %v2032_v54, 5 }
  0x42   : > { %v1638_v8 = vcombine.low %v744_v51, %v747_v60  ;;  %v810_v9 = vsel %vm1870_vm2, %v808_v6, %v809_v55  ;;  %v753_v13 = vrot.slane %v2040_v0, 5  ;;  %v581_v14 = vshrl.u32 %v2071_v56, 16 }
  0x43   : > { %941 = vrot.lane.b32.xlu0 %v1623_v59, %s1812_s28  ;;  %1035 = vrot.lane.b32.xlu1 %v1646_v57, %s1811_s27  ;;  %v1647_v16 = vcombine.low %v807_v5, %v810_v9  ;;  %v751_v17 = vsel %vm1870_vm2, %v1591_v62, %v750_v37  ;;  %v752_v18 = vrot.slane %v750_v37, 4  ;;  %v584_v23 = vshll.u32 %v2071_v56, 16  ;;  %v2125_v57 = vld [vmem:[%s1868_s26 + $0xa4] sm:$0x1] }
  0x44   : > { %v583_v25 = vrot.slane %v581_v14, 4  ;;  %v590_v0 = vshll.u32 %v2082_v1, 16  ;;  %v594_v26 = vshrl.u32 %v2082_v1, 16  ;;  %v600_v27 = vshll.u32 %v2085_v7, 16  ;;  %v2133_v14 = vld [vmem:[%s1868_s26 + $0x3c] sm:$0xf] }
  0x45   : > { %v754_v31 = vsel %vm1870_vm2, %v752_v18, %v753_v13  ;;  %v586_v32 = vrot.slane %v584_v23, 5  ;;  %v389_v33 = vshrl.u32 %v2092_v15, 16  ;;  %v392_v34 = vshll.u32 %v2092_v15, 16 }
  0x46   : > { %v1639_v38 = vcombine.low %v751_v17, %v754_v31  ;;  %v592_v39 = vrot.slane %v590_v0, 5  ;;  %v596_v22 = vrot.slane %v594_v26, 4  ;;  %v602_v41 = vrot.slane %v600_v27, 5 }
  0x47   : > { %1019 = vrot.lane.b32.xlu0 %v1638_v8, %s1811_s27  ;;  %1037 = vrot.lane.b32.xlu1 %v1647_v16, %s1811_s27  ;;  %v587_v42 = vor.u32 %v586_v32, %v583_v25  ;;  %v391_v45 = vrot.slane %v389_v33, 4  ;;  %v394_v52 = vrot.slane %v392_v34, 5  ;;  %v398_v46 = vshll.u32 %v2100_v24, 16  ;;  %v2140_v25 = vld [vmem:[%s1868_s26 + $0x40] sm:$0xf] }
  0x48   : > { %v597_v47 = vor.u32 %v596_v22, %v592_v39  ;;  %v402_v48 = vshrl.u32 %v2100_v24, 16  ;;  %v408_v49 = vshll.u32 %v2106_v30, 16  ;;  %v605_v51 = vshrl.u32 %v2113_v35, 16  ;;  %v2145_v32 = vld [vmem:[%s1868_s26 + $0x44] sm:$0x1] }
  0x49   : > { %v588_v53 = vrot.slane %v587_v42, 4  ;;  %v395_v55 = vor.u32 %v394_v52, %v391_v45  ;;  %v400_v12 = vrot.slane %v398_v46, 5  ;;  %v608_v5 = vshll.u32 %v2113_v35, 16 }
  0x4a   : > { %v598_v6 = vrot.slane %v597_v47, 4  ;;  %v404_v59 = vrot.slane %v402_v48, 4  ;;  %v410_v60 = vrot.slane %v408_v49, 5  ;;  %v607_v62 = vrot.slane %v605_v51, 4 }
  0x4b   : > { %1021 = vrot.lane.b32.xlu0 %v1639_v38, %s1811_s27  ;;  %v593_v37 = vsel %vm1947_vm5, %v588_v53, %v592_v39  ;;  %v396_v8 = vrot.slane %v395_v55, 4  ;;  %v610_v9 = vrot.slane %v608_v5, 5  ;;  %v614_v13 = vshll.u32 %v2121_v50, 16 }
  0x4c   : > { %v603_v16 = vsel %vm1947_vm5, %v598_v6, %v602_v41  ;;  %v405_v17 = vor.u32 %v404_v59, %v400_v12  ;;  %v618_v18 = vshrl.u32 %v2121_v50, 16  ;;  %v624_v23 = vshll.u32 %v2125_v57, 16 }
  0x4d   : > { %v1632_v0 = vcombine.low %v593_v37, %v603_v16  ;;  %v401_v26 = vsel %vm1947_vm5, %v396_v8, %v400_v12  ;;  %v611_v27 = vor.u32 %v610_v9, %v607_v62  ;;  %v616_v31 = vrot.slane %v614_v13, 5 }
  0x4e   : > { %v406_v33 = vrot.slane %v405_v17, 4  ;;  %v620_v34 = vrot.slane %v618_v18, 4  ;;  %v626_v38 = vrot.slane %v624_v23, 5  ;;  %v413_v39 = vshrl.u32 %v2133_v14, 16 }
  0x4f   : > { %959 = vrot.lane.b32.xlu1 %v1632_v0, %s1812_s28  ;;  %v612_v22 = vrot.slane %v611_v27, 4  ;;  %v416_v41 = vshll.u32 %v2133_v14, 16  ;;  %v422_v42 = vshll.u32 %v2140_v25, 16  ;;  %v426_v45 = vshrl.u32 %v2140_v25, 16 }
  0x50   : > { %v411_v52 = vsel %vm1947_vm5, %v406_v33, %v410_v60  ;;  %v621_v46 = vor.u32 %v620_v34, %v616_v31  ;;  %v415_v47 = vrot.slane %v413_v39, 4  ;;  %v432_v48 = vshll.u32 %v2145_v32, 16 }
  0x51   : > { %v1624_v49 = vcombine.low %v401_v26, %v411_v52  ;;  %v617_v51 = vsel %vm1947_vm5, %v612_v22, %v616_v31  ;;  %v418_v53 = vrot.slane %v416_v41, 5  ;;  %v424_v55 = vrot.slane %v422_v42, 5  ;;  %v2179_v22 = vld [vmem:[%s1868_s26 + $0xa8] sm:$0xf] }
  0x52   : > { %v622_v12 = vrot.slane %v621_v46, 4  ;;  %v428_v5 = vrot.slane %v426_v45, 4  ;;  %v434_v6 = vrot.slane %v432_v48, 5  ;;  %v1600_v59 = vrot.slane %v2071_v56, 9  ;;  %v2187_v46 = vld [vmem:[%s1868_s26 + $0xac] sm:$0xf] }
  0x53   : > { %943 = vrot.lane.b32.xlu0 %v1624_v49, %s1812_s28  ;;  %v419_v62 = vor.u32 %v418_v53, %v415_v47  ;;  %v813_v60 = vrot.slane %v2082_v1, 5  ;;  %v816_v37 = vrot.slane %v2085_v7, 5  ;;  %v1592_v8 = vrot.slane %v2092_v15, 9  ;;  %v2190_v47 = vld [vmem:[%s1868_s26 + $0xb0] sm:$0x1] }
  0x54   : > { %v627_v9 = vsel %vm1947_vm5, %v622_v12, %v626_v38  ;;  %v429_v13 = vor.u32 %v428_v5, %v424_v55  ;;  %v757_v16 = vrot.slane %v2100_v24, 5  ;;  %v760_v17 = vrot.slane %v2106_v30, 5 }
  0x55   : > { %v1633_v18 = vcombine.low %v617_v51, %v627_v9  ;;  %v420_v23 = vrot.slane %v419_v62, 4  ;;  %v814_v0 = vsel %vm1870_vm2, %v1600_v59, %v813_v60  ;;  %v815_v26 = vrot.slane %v813_v60, 4 }
  0x56   : > { %v430_v7 = vrot.slane %v429_v13, 4  ;;  %v758_v27 = vsel %vm1870_vm2, %v1592_v8, %v757_v16  ;;  %v759_v31 = vrot.slane %v757_v16, 4  ;;  %v1601_v33 = vrot.slane %v2113_v35, 9 }
  0x57   : > { %961 = vrot.lane.b32.xlu1 %v1633_v18, %s1812_s28  ;;  %v425_v30 = vsel %vm1947_vm5, %v420_v23, %v424_v55  ;;  %v817_v34 = vsel %vm1870_vm2, %v815_v26, %v816_v37  ;;  %v820_v38 = vrot.slane %v2121_v50, 5  ;;  %v823_v39 = vrot.slane %v2125_v57, 5  ;;  %v2209_v37 = vld [vmem:[%s1868_s26 + $0x4c] sm:$0xf]  ;;  %v2214_v26 = vld [vmem:[%s1868_s26 + $0x50] sm:$0x1] }
  0x58   : > { %v435_v41 = vsel %vm1947_vm5, %v430_v7, %v434_v6  ;;  %v1648_v42 = vcombine.low %v814_v0, %v817_v34  ;;  %v761_v45 = vsel %vm1870_vm2, %v759_v31, %v760_v17  ;;  %v1593_v52 = vrot.slane %v2133_v14, 9  ;;  %v2199_v6 = vld [vmem:[%s1868_s26 + $0x48] sm:$0xf] }
  0x59   : > { %v1625_v48 = vcombine.low %v425_v30, %v435_v41  ;;  %v1640_v49 = vcombine.low %v758_v27, %v761_v45  ;;  %v821_v57 = vsel %vm1870_vm2, %v1601_v33, %v820_v38  ;;  %v822_v51 = vrot.slane %v820_v38, 4  ;;  %v2222_v30 = vld [vmem:[%s1868_s26 + $0xb4] sm:$0xf] }
  0x5a   : > { %v764_v53 = vrot.slane %v2140_v25, 5  ;;  %v767_v55 = vrot.slane %v2145_v32, 5  ;;  %v629_v12 = vshrl.u32 %v2179_v22, 16  ;;  %v632_v5 = vshll.u32 %v2179_v22, 16 }
  0x5b   : > { %945 = vrot.lane.b32.xlu0 %v1625_v48, %s1812_s28  ;;  %1039 = vrot.lane.b32.xlu1 %v1648_v42, %s1811_s27  ;;  %v824_v59 = vsel %vm1870_vm2, %v822_v51, %v823_v39  ;;  %v638_v62 = vshll.u32 %v2187_v46, 16  ;;  %v642_v60 = vshrl.u32 %v2187_v46, 16  ;;  %v648_v32 = vshll.u32 %v2190_v47, 16  ;;  %v2228_v42 = vld [vmem:[%s1868_s26 + $0xb8] sm:$0xf] }
  0x5c   : > { %v1649_v8 = vcombine.low %v821_v57, %v824_v59  ;;  %v765_v9 = vsel %vm1870_vm2, %v1593_v52, %v764_v53  ;;  %v766_v13 = vrot.slane %v764_v53, 4  ;;  %v631_v16 = vrot.slane %v629_v12, 4 }
  0x5d   : > { %v634_v17 = vrot.slane %v632_v5, 5  ;;  %v640_v18 = vrot.slane %v638_v62, 5  ;;  %v644_v23 = vrot.slane %v642_v60, 4  ;;  %v650_v0 = vrot.slane %v648_v32, 5  ;;  %v2238_v32 = vld [vmem:[%s1868_s26 + $0x54] sm:$0xf] }
  0x5e   : > { %v768_v7 = vsel %vm1870_vm2, %v766_v13, %v767_v55  ;;  %v437_v27 = vshrl.u32 %v2199_v6, 16  ;;  %v440_v31 = vshll.u32 %v2199_v6, 16  ;;  %v446_v33 = vshll.u32 %v2209_v37, 16 }
  0x5f   : > { %1023 = vrot.lane.b32.xlu0 %v1640_v49, %s1811_s27  ;;  %1041 = vrot.lane.b32.xlu1 %v1649_v8, %s1811_s27  ;;  %v1641_v34 = vcombine.low %v765_v9, %v768_v7  ;;  %v635_v38 = vor.u32 %v634_v17, %v631_v16  ;;  %v645_v39 = vor.u32 %v644_v23, %v640_v18  ;;  %v450_v41 = vshrl.u32 %v2209_v37, 16  ;;  %v2232_v49 = vld [vmem:[%s1868_s26 + $0xbc] sm:$0x1]  ;;  %v2246_v17 = vld [vmem:[%s1868_s26 + $0x58] sm:$0xf] }
  0x60   : > { %v439_v45 = vrot.slane %v437_v27, 4  ;;  %v442_v52 = vrot.slane %v440_v31, 5  ;;  %v448_v48 = vrot.slane %v446_v33, 5  ;;  %v456_v57 = vshll.u32 %v2214_v26, 16 }
  0x61   : > { %v636_v51 = vrot.slane %v635_v38, 4  ;;  %v646_v53 = vrot.slane %v645_v39, 4  ;;  %v452_v55 = vrot.slane %v450_v41, 4  ;;  %v653_v12 = vshrl.u32 %v2222_v30, 16  ;;  %v264_v41 = vld [vmem:[%s1868_s26 + $0x5c] sm:$0x1] }
  0x62   : > { %v443_v5 = vor.u32 %v442_v52, %v439_v45  ;;  %v458_v59 = vrot.slane %v456_v57, 5  ;;  %v656_v62 = vshll.u32 %v2222_v30, 16  ;;  %v662_v60 = vshll.u32 %v2228_v42, 16 }
  0x63   : > { %1025 = vrot.lane.b32.xlu0 %v1641_v34, %s1811_s27  ;;  %v641_v8 = vsel %vm1947_vm5, %v636_v51, %v640_v18  ;;  %v651_v9 = vsel %vm1947_vm5, %v646_v53, %v650_v0  ;;  %v453_v13 = vor.u32 %v452_v55, %v448_v48  ;;  %v655_v16 = vrot.slane %v653_v12, 4 }
  0x64   : > { %v1634_v23 = vcombine.low %v641_v8, %v651_v9  ;;  %v444_v7 = vrot.slane %v443_v5, 4  ;;  %v658_v27 = vrot.slane %v656_v62, 5  ;;  %v664_v31 = vrot.slane %v662_v60, 5 }
  0x65   : > { %v454_v33 = vrot.slane %v453_v13, 4  ;;  %v666_v38 = vshrl.u32 %v2228_v42, 16  ;;  %v672_v34 = vshll.u32 %v2232_v49, 16  ;;  %v461_v39 = vshrl.u32 %v2238_v32, 16 }
  0x66   : > { %963 = vrot.lane.b32.xlu1 %v1634_v23, %s1812_s28  ;;  %v449_v18 = vsel %vm1947_vm5, %v444_v7, %v448_v48  ;;  %v659_v0 = vor.u32 %v658_v27, %v655_v16  ;;  %v464_v45 = vshll.u32 %v2238_v32, 16  ;;  %v470_v52 = vshll.u32 %v2246_v17, 16 }
  0x67   : > { %v459_v57 = vsel %vm1947_vm5, %v454_v33, %v458_v59  ;;  %v668_v51 = vrot.slane %v666_v38, 4  ;;  %v674_v53 = vrot.slane %v672_v34, 5  ;;  %v463_v55 = vrot.slane %v461_v39, 4 }
  0x68   : > { %v1626_v12 = vcombine.low %v449_v18, %v459_v57  ;;  %v660_v5 = vrot.slane %v659_v0, 4  ;;  %v466_v62 = vrot.slane %v464_v45, 5  ;;  %v472_v60 = vrot.slane %v470_v52, 5 }
  0x69   : > { %v669_v8 = vor.u32 %v668_v51, %v664_v31  ;;  %v474_v9 = vshrl.u32 %v2246_v17, 16  ;;  %v480_v48 = vshll.u32 %v264_v41, 16  ;;  %v1602_v13 = vrot.slane %v2179_v22, 9 }
  0x6a   : > { %947 = vrot.lane.b32.xlu0 %v1626_v12, %s1812_s28  ;;  %v665_v16 = vsel %vm1947_vm5, %v660_v5, %v664_v31  ;;  %v467_v23 = vor.u32 %v466_v62, %v463_v55  ;;  %v827_v59 = vrot.slane %v2187_v46, 5  ;;  %v830_v7 = vrot.slane %v2190_v47, 5 }
  0x6b   : > { %v670_v27 = vrot.slane %v669_v8, 4  ;;  %v476_v33 = vrot.slane %v474_v9, 4  ;;  %v482_v38 = vrot.slane %v480_v48, 5  ;;  %v1594_v34 = vrot.slane %v2199_v6, 9 }
  0x6c   : > { %v468_v39 = vrot.slane %v467_v23, 4  ;;  %v828_v18 = vsel %vm1870_vm2, %v1602_v13, %v827_v59  ;;  %v829_v0 = vrot.slane %v827_v59, 4  ;;  %v771_v45 = vrot.slane %v2209_v37, 5 }
  0x6d   : > { %v675_v31 = vsel %vm1947_vm5, %v670_v27, %v674_v53  ;;  %v477_v52 = vor.u32 %v476_v33, %v472_v60  ;;  %v774_v57 = vrot.slane %v2214_v26, 5  ;;  %v1603_v47 = vrot.slane %v2222_v30, 9  ;;  %v1770_v26 = vld [vmem:[%s2563_s1 + $0x10] ss:$0 sps:$4 sm:$0x33]  }
  0x6e   : > { %v1635_v51 = vcombine.low %v665_v16, %v675_v31  ;;  %v473_v55 = vsel %vm1947_vm5, %v468_v39, %v472_v60  ;;  %v831_v12 = vsel %vm1870_vm2, %v829_v0, %v830_v7  ;;  %v772_v5 = vsel %vm1870_vm2, %v1594_v34, %v771_v45  ;;  %1739 = vmatprep.subr.msk.bf16.mxu0 %vm1182_vm6, %v1770_v26 }
  0x6f   : > { %v478_v62 = vrot.slane %v477_v52, 4  ;;  %v1650_v8 = vcombine.low %v828_v18, %v831_v12  ;;  %v773_v9 = vrot.slane %v771_v45, 4  ;;  %v834_v53 = vrot.slane %v2228_v42, 5  ;;  %1740 = vmatprep.subr.msk.bf16.mxu1 %vm1182_vm6, %v1770_v26 }
  0x70   : > { %965 = vrot.lane.b32.xlu1 %v1635_v51, %s1812_s28  ;;  %v837_v48 = vrot.slane %v2232_v49, 5  ;;  %v1595_v60 = vrot.slane %v2238_v32, 9  ;;  %v778_v13 = vrot.slane %v2246_v17, 5  ;;  %v781_v16 = vrot.slane %v264_v41, 5 }
  0x71   : > { %v483_v23 = vsel %vm1947_vm5, %v478_v62, %v482_v38  ;;  %v775_v59 = vsel %vm1870_vm2, %v773_v9, %v774_v57  ;;  %v835_v7 = vsel %vm1870_vm2, %v1603_v47, %v834_v53  ;;  %v836_v27 = vrot.slane %v834_v53, 4 }
  0x72   : > { %v1627_v33 = vcombine.low %v473_v55, %v483_v23  ;;  %v780_v34 = vrot.slane %v778_v13, 4  ;;  %v1642_v39 = vcombine.low %v772_v5, %v775_v59  ;;  %v779_v41 = vsel %vm1870_vm2, %v1595_v60, %v778_v13 }
  0x73   : > { %v838_v49 = vsel %vm1870_vm2, %v836_v27, %v837_v48  ;;  %v1184_v18 = vsel %vm1182_vm6, %v1770_v26, 0  ;;  %v1616_v45 = vcombine.low %v2071_v56, %v2082_v1  ;;  %v1608_v31 = vcombine.low %v2092_v15, %v2100_v24 }
  0x74   : > { %949 = vrot.lane.b32.xlu0 %v1627_v33, %s1812_s28  ;;  %1043 = vrot.lane.b32.xlu1 %v1650_v8, %s1811_s27  ;;  %v1651_v63 = vcombine.low %v835_v7, %v838_v49  ;;  %v782_v38 = vsel %vm1870_vm2, %v780_v34, %v781_v16  ;;  %v1617_v2 = vcombine.low %v2113_v35, %v2121_v50 }
  0x75   : > { %1700 = vmatpush3.bf16.msra.mxu0 %v1184_v18  ;;  %1738 = vmatpush3.bf16.msra.mxu1 %v1184_v18  ;;  %v1643_v0 = vcombine.low %v779_v41, %v782_v38  ;;  %v1609_v52 = vcombine.low %v2133_v14, %v2140_v25  ;;  %v1618_v57 = vcombine.low %v2179_v22, %v2187_v46 }
  0x76   : > { %v1610_v47 = vcombine.low %v2199_v6, %v2209_v37  ;;  %v1619_v51 = vcombine.low %v2222_v30, %v2228_v42  ;;  %v1611_v55 = vcombine.low %v2238_v32, %v2246_v17  ;;  %v1605_v9 = vcombine.low %v1915_v28, %v1918_v29  ;;  %v2412_v42 = vld [vmem:[%s2564_s2] ss:$0 sm:$0xff] }
  0x77   : > { %v1604_v26 = vcombine.low %v1888_v10, %v1891_v11  ;;  %v1613_v28 = vcombine.low %v1900_v19, %v1903_v21  ;;  %v1612_v10 = vcombine.low %v1875_v3, %v1878_v4  ;;  %v1614_v34 = vcombine.low %v1967_v40, %v1972_v44 }
  0x78   : > { %1027 = vrot.lane.b32.xlu0 %v1642_v39, %s1811_s27  ;;  %1045 = vrot.lane.b32.xlu1 %v1651_v63, %s1811_s27  ;;  %v1606_v4 = vcombine.low %v1990_v58, %v1993_v61  ;;  %v1615_v49 = vcombine.low %v2006_v20, %v2013_v36  ;;  %v1607_v40 = vcombine.low %v2024_v43, %v2032_v54 }
  0x7c   : > { %1029 = vrot.lane.b32.xlu0 %v1643_v0, %s1811_s27 }
  0x8c   : > { %v1032_v12 = vpop.permute.xlu1 %1031 }
  0x8e   : > { %v1016_v5 = vpop.permute.xlu0 %1015 }
  0x90   : > { %v1034_v62 = vpop.permute.xlu1 %1033 }
  0x92   : > { %v1018_v8 = vpop.permute.xlu0 %1017 }
  0x98   : > { %v938_v53 = vpop.permute.xlu1 %937 }
  0x99   : > { %v1053_v48 = vsel %vm1047_vm7, %v1605_v9, %v938_v53 }
  0x9a   : > { %v1100_v16 = vsel %vm1096_vm8, %v1053_v48, %v1018_v8 }
  0x9c   : > { %v936_v60 = vpop.permute.xlu0 %935 }
  0x9d   : > { %v1050_v13 = vsel %vm1047_vm7, %v1604_v26, %v936_v60 }
  0x9e   : > { %v1098_v23 = vsel %vm1096_vm8, %v1050_v13, %v1016_v5 }
  0x9f   : > { %1701 = vmatprep.mubr.msk.bf16.mxu0 %vm1149_vm9, %v1098_v23  ;;  %v954_v29 = vpop.permute.xlu1 %953 }
  0xa0   : > { %1702 = vmatmul.mubr.msk.bf16.vlgmr.msra.gmra.mrb[0].mxu0 %vm1149_vm9, %v1100_v16  ;;  %v1077_v11 = vsel %vm1047_vm7, %v1613_v28, %v954_v29 }
  0xa1   : > { %v1116_v27 = vsel %vm1096_vm8, %v1077_v11, %v1034_v62 }
  0xa6   : > { %v952_v59 = vpop.permute.xlu0 %951 }
  0xa7   : > { %v1074_v7 = vsel %vm1047_vm7, %v1612_v10, %v952_v59  ;;  %v956_v19 = vpop.permute.xlu1 %955 }
  0xa8   : > { %v1114_v33 = vsel %vm1096_vm8, %v1074_v7, %v1032_v12  ;;  %v1080_v3 = vsel %vm1047_vm7, %v1614_v34, %v956_v19 }
  0xa9   : > { %1717 = vmatprep.mubr.msk.bf16.mxu1 %vm1149_vm9, %v1114_v33 }
  0xaa   : > { %1718 = vmatmul.mubr.msk.bf16.vlgmr.msra.gmra.mrb[0].mxu1 %vm1149_vm9, %v1116_v27 }
  0xac   : > { %v940_v21 = vpop.permute.xlu0 %939 }
  0xad   : > { %v1056_v18 = vsel %vm1047_vm7, %v1606_v4, %v940_v21 }
  0xb1   : > { %v958_v39 = vpop.permute.xlu1 %957 }
  0xb2   : > { %v1083_v0 = vsel %vm1047_vm7, %v1615_v49, %v958_v39 }
  0xb5   : > { %v942_v63 = vpop.permute.xlu0 %941  ;;  %v1036_v41 = vpop.permute.xlu1 %1035 }
  0xb6   : > { %v1118_v38 = vsel %vm1096_vm8, %v1080_v3, %v1036_v41  ;;  %v1059_v20 = vsel %vm1047_vm7, %v1607_v40, %v942_v63 }
  0xb7   : > { %1721 = vmatprep.mubr.msk.bf16.mxu1 %vm1149_vm9, %v1118_v38 }
  0xb9   : > { %v1020_v44 = vpop.permute.xlu0 %1019  ;;  %v1038_v12 = vpop.permute.xlu1 %1037 }
  0xba   : > { %v1102_v58 = vsel %vm1096_vm8, %v1056_v18, %v1020_v44  ;;  %v1120_v61 = vsel %vm1096_vm8, %v1083_v0, %v1038_v12 }
  0xbb   : > { %1705 = vmatprep.mubr.msk.bf16.mxu0 %vm1149_vm9, %v1102_v58  ;;  %1722 = vmatmul.mubr.msk.bf16.gmra.mrb[4].mxu1 %vm1149_vm9, %v1120_v61 }
  0xbd   : > { %v1022_v36 = vpop.permute.xlu0 %1021 }
  0xbe   : > { %v1104_v5 = vsel %vm1096_vm8, %v1059_v20, %v1022_v36 }
  0xbf   : > { %1706 = vmatmul.mubr.msk.bf16.gmra.mrb[4].mxu0 %vm1149_vm9, %v1104_v5 }
  0xc1   : > { %v960_v62 = vpop.permute.xlu1 %959 }
  0xc2   : > { %v1086_v54 = vsel %vm1047_vm7, %v1616_v45, %v960_v62 }
  0xc5   : > { %v944_v8 = vpop.permute.xlu0 %943 }
  0xc6   : > { %v1062_v48 = vsel %vm1047_vm7, %v1608_v31, %v944_v8 }
  0xc9   : > { %v962_v43 = vpop.permute.xlu1 %961 }
  0xca   : > { %v1089_v60 = vsel %vm1047_vm7, %v1617_v2, %v962_v43 }
  0xcd   : > { %v946_v9 = vpop.permute.xlu0 %945  ;;  %v1040_v53 = vpop.permute.xlu1 %1039 }
  0xce   : > { %v1122_v26 = vsel %vm1096_vm8, %v1086_v54, %v1040_v53  ;;  %v1065_v15 = vsel %vm1047_vm7, %v1609_v52, %v946_v9 }
  0xcf   : > { %1725 = vmatprep.mubr.msk.bf16.mxu1 %vm1149_vm9, %v1122_v26 }
  0xd1   : > { %v1024_v13 = vpop.permute.xlu0 %1023  ;;  %v1042_v56 = vpop.permute.xlu1 %1041 }
  0xd2   : > { %v1106_v1 = vsel %vm1096_vm8, %v1062_v48, %v1024_v13  ;;  %v1124_v45 = vsel %vm1096_vm8, %v1089_v60, %v1042_v56 }
  0xd3   : > { %1709 = vmatprep.mubr.msk.bf16.mxu0 %vm1149_vm9, %v1106_v1  ;;  %1726 = vmatmul.mubr.msk.bf16.gmra.mrb[8].mxu1 %vm1149_vm9, %v1124_v45 }
  0xd5   : > { %v1026_v24 = vpop.permute.xlu0 %1025 }
  0xd6   : > { %v1108_v35 = vsel %vm1096_vm8, %v1065_v15, %v1026_v24 }
  0xd7   : > { %1710 = vmatmul.mubr.msk.bf16.gmra.mrb[8].mxu0 %vm1149_vm9, %v1108_v35 }
  0xd8   : > { %v964_v50 = vpop.permute.xlu1 %963 }
  0xd9   : > { %v1092_v16 = vsel %vm1047_vm7, %v1618_v57, %v964_v50 }
  0xdc   : > { %v948_v31 = vpop.permute.xlu0 %947 }
  0xdd   : > { %v1068_v14 = vsel %vm1047_vm7, %v1610_v47, %v948_v31 }
  0xe2   : > { %v966_v2 = vpop.permute.xlu1 %965 }
  0xe3   : > { %v1095_v25 = vsel %vm1047_vm7, %v1619_v51, %v966_v2  ;;  %v2417_v51 = vld [vmem:[%s2565_s3] ss:$0 sm:$0xff] }
  0xe6   : > { %v950_v23 = vpop.permute.xlu0 %949  ;;  %v1044_v28 = vpop.permute.xlu1 %1043 }
  0xe7   : > { %v1126_v29 = vsel %vm1096_vm8, %v1092_v16, %v1044_v28  ;;  %v1071_v6 = vsel %vm1047_vm7, %v1611_v55, %v950_v23 }
  0xe8   : > { %1729 = vmatprep.mubr.msk.bf16.mxu1 %vm1149_vm9, %v1126_v29 }
  0xea   : > { %v1028_v22 = vpop.permute.xlu0 %1027  ;;  %v1046_v46 = vpop.permute.xlu1 %1045 }
  0xeb   : > { %v1110_v52 = vsel %vm1096_vm8, %v1068_v14, %v1028_v22  ;;  %v1128_v57 = vsel %vm1096_vm8, %v1095_v25, %v1046_v46 }
  0xec   : > { %1713 = vmatprep.mubr.msk.bf16.mxu0 %vm1149_vm9, %v1110_v52  ;;  %1730 = vmatmul.mubr.msk.bf16.gmra.mrb[12].mxu1 %vm1149_vm9, %v1128_v57 }
  0xee   : > { %v1030_v37 = vpop.permute.xlu0 %1029 }
  0xef   : > { %v1112_v30 = vsel %vm1096_vm8, %v1071_v6, %v1030_v37 }
  0xf0   : > { %1714 = vmatmul.mubr.msk.bf16.gmra.mrb[12].mxu0 %vm1149_vm9, %v1112_v30 }
 0x173   : > { %v1703_v47 = vpop.f32.mrb[0].mxu0 }
 0x174   : > { %v1356_v32 = vmul.f32 %v1703_v47, %v2412_v42  ;;  %v1220_v17 = vpop.f32.mrb[1].mxu0 }
 0x175   : > { %v1354_v55 = vmul.f32 %v2412_v42, %v1220_v17  ;;  %v1704_v10 = vpop.f32.mrb[2].mxu0 }
 0x176   : > { %v1395_v11 = vadd.f32 %v2417_v51, %v1356_v32  ;;  %v1357_v59 = vmul.f32 %v1704_v10, %v2412_v42  ;;  %v1223_v7 = vpop.f32.mrb[3].mxu0 }
 0x177   : > { %v1393_v27 = vadd.f32 %v2417_v51, %v1354_v55  ;;  %v1355_v33 = vmul.f32 %v2412_v42, %v1223_v7 }
 0x178   : > { %v1427_v19 = vmax.f32 %v1395_v11, 0.0  ;;  %v1396_v21 = vadd.f32 %v2417_v51, %v1357_v59 }
 0x179   : > { %v1425_v34 = vmax.f32 %v1393_v27, 0.0  ;;  %v1394_v39 = vadd.f32 %v2417_v51, %v1355_v33 }
 0x17a   : > { %1460 = vst.msk [vmem:[%s2427_s12 + $0x10] sm:$0xff] %vm1457_vm10, %v1427_v19  ;;  %v1428_v3 = vmax.f32 %v1396_v21, 0.0 }
 0x17b   : > { %1458 = vst.msk [vmem:[%s2427_s12] sm:$0xff] %vm1457_vm10, %v1425_v34  ;;  %v1426_v4 = vmax.f32 %v1394_v39, 0.0 }
 0x17c   : > { %1461 = vst.msk [vmem:[%s2427_s12 + $0x18] sm:$0xff] %vm1457_vm10, %v1428_v3 }
 0x17d   : > { %1459 = vst.msk [vmem:[%s2427_s12 + $0x8] sm:$0xff] %vm1457_vm10, %v1426_v4  ;;  %v1719_v49 = vpop.f32.mrb[0].mxu1 }
 0x17e   : > { %v1372_v63 = vmul.f32 %v1719_v49, %v2412_v42  ;;  %v1284_v41 = vpop.f32.mrb[1].mxu1 }
 0x17f   : > { %v1370_v38 = vmul.f32 %v2412_v42, %v1284_v41  ;;  %v1720_v18 = vpop.f32.mrb[2].mxu1 }
 0x180   : > { %v1411_v0 = vadd.f32 %v2417_v51, %v1372_v63  ;;  %v1373_v40 = vmul.f32 %v1720_v18, %v2412_v42  ;;  %v1287_v44 = vpop.f32.mrb[3].mxu1 }
 0x181   : > { %v1409_v12 = vadd.f32 %v2417_v51, %v1370_v38  ;;  %v1371_v58 = vmul.f32 %v2412_v42, %v1287_v44 }
 0x182   : > { %v1443_v61 = vmax.f32 %v1411_v0, 0.0  ;;  %v1412_v20 = vadd.f32 %v2417_v51, %v1373_v40 }
 0x183   : > { %v1441_v36 = vmax.f32 %v1409_v12, 0.0  ;;  %v1410_v5 = vadd.f32 %v2417_v51, %v1371_v58 }
 0x184   : > { %1476 = vst.msk [vmem:[%s2427_s12 + $0x90] sm:$0xff] %vm1457_vm10, %v1443_v61  ;;  %v1444_v62 = vmax.f32 %v1412_v20, 0.0 }
 0x185   : > { %1474 = vst.msk [vmem:[%s2427_s12 + $0x80] sm:$0xff] %vm1457_vm10, %v1441_v36  ;;  %v1442_v8 = vmax.f32 %v1410_v5, 0.0 }
 0x186   : > { %1477 = vst.msk [vmem:[%s2427_s12 + $0x98] sm:$0xff] %vm1457_vm10, %v1444_v62 }
 0x187   : > { %1475 = vst.msk [vmem:[%s2427_s12 + $0x88] sm:$0xff] %vm1457_vm10, %v1442_v8 }
 0x18e   : > { %v1723_v43 = vpop.f32.mrb[4].mxu1 }
 0x18f   : > { %v1376_v54 = vmul.f32 %v1723_v43, %v2412_v42  ;;  %v1300_v9 = vpop.f32.mrb[5].mxu1 }
 0x190   : > { %v1374_v53 = vmul.f32 %v2412_v42, %v1300_v9  ;;  %v1724_v26 = vpop.f32.mrb[6].mxu1 }
 0x191   : > { %v1415_v48 = vadd.f32 %v2417_v51, %v1376_v54  ;;  %v1377_v60 = vmul.f32 %v1724_v26, %v2412_v42  ;;  %v1303_v13 = vpop.f32.mrb[7].mxu1 }
 0x192   : > { %v1707_v56 = vpop.f32.mrb[4].mxu0  ;;  %v1413_v1 = vadd.f32 %v2417_v51, %v1374_v53  ;;  %v1375_v45 = vmul.f32 %v2412_v42, %v1303_v13 }
 0x193   : > { %v1360_v15 = vmul.f32 %v1707_v56, %v2412_v42  ;;  %v1447_v24 = vmax.f32 %v1415_v48, 0.0  ;;  %v1236_v35 = vpop.f32.mrb[5].mxu0  ;;  %v1416_v50 = vadd.f32 %v2417_v51, %v1377_v60 }
 0x194   : > { %v1358_v31 = vmul.f32 %v2412_v42, %v1236_v35  ;;  %v1445_v2 = vmax.f32 %v1413_v1, 0.0  ;;  %v1708_v16 = vpop.f32.mrb[6].mxu0  ;;  %v1414_v23 = vadd.f32 %v2417_v51, %v1375_v45 }
 0x195   : > { %v1399_v28 = vadd.f32 %v2417_v51, %v1360_v15  ;;  %1480 = vst.msk [vmem:[%s2427_s12 + $0xb0] sm:$0xff] %vm1457_vm10, %v1447_v24  ;;  %v1361_v29 = vmul.f32 %v1708_v16, %v2412_v42  ;;  %v1448_v14 = vmax.f32 %v1416_v50, 0.0  ;;  %v1239_v25 = vpop.f32.mrb[7].mxu0 }
 0x196   : > { %v1397_v22 = vadd.f32 %v2417_v51, %v1358_v31  ;;  %1478 = vst.msk [vmem:[%s2427_s12 + $0xa0] sm:$0xff] %vm1457_vm10, %v1445_v2  ;;  %v1359_v46 = vmul.f32 %v2412_v42, %v1239_v25  ;;  %v1446_v52 = vmax.f32 %v1414_v23, 0.0 }
 0x197   : > { %v1431_v57 = vmax.f32 %v1399_v28, 0.0  ;;  %v1400_v6 = vadd.f32 %v2417_v51, %v1361_v29  ;;  %1481 = vst.msk [vmem:[%s2427_s12 + $0xb8] sm:$0xff] %vm1457_vm10, %v1448_v14 }
 0x198   : > { %v1429_v37 = vmax.f32 %v1397_v22, 0.0  ;;  %v1398_v30 = vadd.f32 %v2417_v51, %v1359_v46  ;;  %1479 = vst.msk [vmem:[%s2427_s12 + $0xa8] sm:$0xff] %vm1457_vm10, %v1446_v52 }
 0x199   : > { %1464 = vst.msk [vmem:[%s2427_s12 + $0x30] sm:$0xff] %vm1457_vm10, %v1431_v57  ;;  %v1432_v47 = vmax.f32 %v1400_v6, 0.0 }
 0x19a   : > { %1462 = vst.msk [vmem:[%s2427_s12 + $0x20] sm:$0xff] %vm1457_vm10, %v1429_v37  ;;  %v1430_v32 = vmax.f32 %v1398_v30, 0.0 }
 0x19b   : > { %1465 = vst.msk [vmem:[%s2427_s12 + $0x38] sm:$0xff] %vm1457_vm10, %v1432_v47 }
 0x19c   : > { %1463 = vst.msk [vmem:[%s2427_s12 + $0x28] sm:$0xff] %vm1457_vm10, %v1430_v32 }
 0x1a6   : > { %v1727_v17 = vpop.f32.mrb[8].mxu1 }
 0x1a7   : > { %v1380_v55 = vmul.f32 %v1727_v17, %v2412_v42  ;;  %v1316_v10 = vpop.f32.mrb[9].mxu1 }
 0x1a8   : > { %v1378_v11 = vmul.f32 %v2412_v42, %v1316_v10  ;;  %v1728_v59 = vpop.f32.mrb[10].mxu1 }
 0x1a9   : > { %v1419_v7 = vadd.f32 %v2417_v51, %v1380_v55  ;;  %v1381_v27 = vmul.f32 %v1728_v59, %v2412_v42  ;;  %v1319_v33 = vpop.f32.mrb[11].mxu1 }
 0x1aa   : > { %v1711_v19 = vpop.f32.mrb[8].mxu0  ;;  %v1417_v21 = vadd.f32 %v2417_v51, %v1378_v11  ;;  %v1379_v34 = vmul.f32 %v2412_v42, %v1319_v33 }
 0x1ab   : > { %v1364_v39 = vmul.f32 %v1711_v19, %v2412_v42  ;;  %v1451_v3 = vmax.f32 %v1419_v7, 0.0  ;;  %v1252_v4 = vpop.f32.mrb[9].mxu0  ;;  %v1420_v49 = vadd.f32 %v2417_v51, %v1381_v27 }
 0x1ac   : > { %v1362_v63 = vmul.f32 %v2412_v42, %v1252_v4  ;;  %v1449_v41 = vmax.f32 %v1417_v21, 0.0  ;;  %v1712_v38 = vpop.f32.mrb[10].mxu0  ;;  %v1418_v18 = vadd.f32 %v2417_v51, %v1379_v34 }
 0x1ad   : > { %v1403_v0 = vadd.f32 %v2417_v51, %v1364_v39  ;;  %1484 = vst.msk [vmem:[%s2427_s12 + $0xd0] sm:$0xff] %vm1457_vm10, %v1451_v3  ;;  %v1365_v40 = vmul.f32 %v1712_v38, %v2412_v42  ;;  %v1452_v44 = vmax.f32 %v1420_v49, 0.0  ;;  %v1255_v12 = vpop.f32.mrb[11].mxu0 }
 0x1ae   : > { %v1401_v58 = vadd.f32 %v2417_v51, %v1362_v63  ;;  %1482 = vst.msk [vmem:[%s2427_s12 + $0xc0] sm:$0xff] %vm1457_vm10, %v1449_v41  ;;  %v1363_v61 = vmul.f32 %v2412_v42, %v1255_v12  ;;  %v1450_v20 = vmax.f32 %v1418_v18, 0.0 }
 0x1af   : > { %v1435_v36 = vmax.f32 %v1403_v0, 0.0  ;;  %v1404_v5 = vadd.f32 %v2417_v51, %v1365_v40  ;;  %1485 = vst.msk [vmem:[%s2427_s12 + $0xd8] sm:$0xff] %vm1457_vm10, %v1452_v44 }
 0x1b0   : > { %v1433_v62 = vmax.f32 %v1401_v58, 0.0  ;;  %v1402_v8 = vadd.f32 %v2417_v51, %v1363_v61  ;;  %1483 = vst.msk [vmem:[%s2427_s12 + $0xc8] sm:$0xff] %vm1457_vm10, %v1450_v20 }
 0x1b1   : > { %1468 = vst.msk [vmem:[%s2427_s12 + $0x50] sm:$0xff] %vm1457_vm10, %v1435_v36  ;;  %v1436_v43 = vmax.f32 %v1404_v5, 0.0 }
 0x1b2   : > { %1466 = vst.msk [vmem:[%s2427_s12 + $0x40] sm:$0xff] %vm1457_vm10, %v1433_v62  ;;  %v1434_v54 = vmax.f32 %v1402_v8, 0.0 }
 0x1b3   : > { %1469 = vst.msk [vmem:[%s2427_s12 + $0x58] sm:$0xff] %vm1457_vm10, %v1436_v43 }
 0x1b4   : > { %1467 = vst.msk [vmem:[%s2427_s12 + $0x48] sm:$0xff] %vm1457_vm10, %v1434_v54 }
 0x1bf   : > { %v1731_v9 = vpop.f32.mrb[12].mxu1 }
 0x1c0   : > { %v1384_v53 = vmul.f32 %v1731_v9, %v2412_v42  ;;  %v1332_v26 = vpop.f32.mrb[13].mxu1 }
 0x1c1   : > { %v1382_v48 = vmul.f32 %v2412_v42, %v1332_v26  ;;  %v1732_v60 = vpop.f32.mrb[14].mxu1 }
 0x1c2   : > { %v1423_v13 = vadd.f32 %v2417_v51, %v1384_v53  ;;  %v1385_v56 = vmul.f32 %v1732_v60, %v2412_v42  ;;  %v1335_v1 = vpop.f32.mrb[15].mxu1 }
 0x1c3   : > { %v1715_v45 = vpop.f32.mrb[12].mxu0  ;;  %v1421_v15 = vadd.f32 %v2417_v51, %v1382_v48  ;;  %v1383_v24 = vmul.f32 %v2412_v42, %v1335_v1 }
 0x1c4   : > { %v1368_v35 = vmul.f32 %v1715_v45, %v2412_v42  ;;  %v1455_v50 = vmax.f32 %v1423_v13, 0.0  ;;  %v1268_v31 = vpop.f32.mrb[13].mxu0  ;;  %v1424_v2 = vadd.f32 %v2417_v51, %v1385_v56 }
 0x1c5   : > { %v1366_v16 = vmul.f32 %v2412_v42, %v1268_v31  ;;  %v1453_v23 = vmax.f32 %v1421_v15, 0.0  ;;  %v1716_v28 = vpop.f32.mrb[14].mxu0  ;;  %v1422_v29 = vadd.f32 %v2417_v51, %v1383_v24 }
 0x1c6   : > { %v1407_v14 = vadd.f32 %v2417_v51, %v1368_v35  ;;  %1488 = vst.msk [vmem:[%s2427_s12 + $0xf0] sm:$0xff] %vm1457_vm10, %v1455_v50  ;;  %v1369_v25 = vmul.f32 %v1716_v28, %v2412_v42  ;;  %v1456_v22 = vmax.f32 %v1424_v2, 0.0  ;;  %v1271_v46 = vpop.f32.mrb[15].mxu0 }
 0x1c7   : > { %v1405_v52 = vadd.f32 %v2417_v51, %v1366_v16  ;;  %1486 = vst.msk [vmem:[%s2427_s12 + $0xe0] sm:$0xff] %vm1457_vm10, %v1453_v23  ;;  %v1367_v57 = vmul.f32 %v2412_v42, %v1271_v46  ;;  %v1454_v6 = vmax.f32 %v1422_v29, 0.0 }
 0x1c8   : > { %v1439_v37 = vmax.f32 %v1407_v14, 0.0  ;;  %v1408_v30 = vadd.f32 %v2417_v51, %v1369_v25  ;;  %1489 = vst.msk [vmem:[%s2427_s12 + $0xf8] sm:$0xff] %vm1457_vm10, %v1456_v22 }
 0x1c9   : > { %v1437_v47 = vmax.f32 %v1405_v52, 0.0  ;;  %v1406_v32 = vadd.f32 %v2417_v51, %v1367_v57  ;;  %1487 = vst.msk [vmem:[%s2427_s12 + $0xe8] sm:$0xff] %vm1457_vm10, %v1454_v6 }
 0x1ca   : > { %1472 = vst.msk [vmem:[%s2427_s12 + $0x70] sm:$0xff] %vm1457_vm10, %v1439_v37  ;;  %v1440_v17 = vmax.f32 %v1408_v30, 0.0 }
 0x1cb   : > { %1470 = vst.msk [vmem:[%s2427_s12 + $0x60] sm:$0xff] %vm1457_vm10, %v1437_v47  ;;  %v1438_v55 = vmax.f32 %v1406_v32, 0.0 }
 0x1cc   : > { %1473 = vst.msk [vmem:[%s2427_s12 + $0x78] sm:$0xff] %vm1457_vm10, %v1440_v17 }
 0x1cd   : > { %1471 = vst.msk [vmem:[%s2427_s12 + $0x68] sm:$0xff] %vm1457_vm10, %v1438_v55 }
 0x1ce PF: > { %s14_s17 = sadd.s32 1, %s1809_s17   ;;  %s2571_s15 = smov %s1805_s16 }
 0x1cf   : > { %p11_p5 = scmp.ge.s32.totalorder %s14_s17, 4   ;;  %s2572_s16 = smov %s2574_s18 }
 0x1d1   :  { %13 = sbr.rel (!%p11_p5) target bundleno = 2 (0x2), region = 66 }

// kernel: layer_forward.2
= control target key start
LH: loop header
LB: loop body
LE: loop exit
PB: predicated region body
PF: predicated region fallthrough
CT: control target
= control target key end

     0   :  { %s1828_s12 = smov 0   ;;  %s1830_s13 = smov 0   ;;  %s2414_s0 = inlined_call_operand.vmem [shape: bf16[2,16,18,12], index: 0, kind: input, shape index: {}]   ;;  %s2415_s1 = inlined_call_operand.vmem [shape: bf16[36,128], index: 1, kind: input, shape index: {}]   ;;  %s2416_s2 = inlined_call_operand.vmem [shape: f32[2,1,1,128], index: 2, kind: output, shape index: {0}]   ;;  %s2417_s3 = inlined_call_operand.vmem [shape: f32[2,1,1,128], index: 3, kind: output, shape index: {1}]  }
   0x1   :  { %s1832_s14 = smov 0  }
   0x2 LB: > { %s26_s15 = sadd.s32 1, %s1800_s13  ;;  %p1584_p0 = scmp.ge.s32.totalorder %s1804_s14, 1  ;;  %s1804_s14 = sphi %s1832_s14, %s14_s14   ;;  %s1800_s13 = sphi %s1830_s13, %s2423_s13   ;;  %s1796_s12 = sphi %s1828_s12, %s2422_s12  }
   0x3   : > { %p28_p1 = scmp.ge.s32.totalorder %s26_s15, 2  ;;  %p164_p2 = scmp.lt.s32.totalorder %s1804_s14, 3 }
   0x5   : > { %s2425_s15 = smov (%p28_p1, %s26_s15), 0  ;;  %p165_p3 = pnand %p1584_p0, %p164_p2 }
   0x6   : > { %p201_p4 = scmp.lt.s32.totalorder (!%p165_p3), %s1796_s12, 1  ;;  %v1763_v0 = vld [vmem:[%s2415_s1] sm:$0xff] (!%p165_p3)   ;;  %vm707_vm0 = vcmask (!%p165_p3), 1042432   ;;  %vm708_vm1 = vcmask (!%p165_p3), 1046532   ;;  %v1764_v1 = vld [vmem:[%s2415_s1 + $0x8] sm:$0xff] (!%p165_p3)   ;;  %s1806_s24 = smov (!%p165_p3), 24  }
   0x7   : > { %168 = sbr.rel (%p165_p3) target bundleno = 558 (0x22e), region = 28  ;;  %1690 = vmatprep.subr.bf16.mxu0 (!%p165_p3), %v1763_v0  ;;  %1728 = vmatprep.subr.bf16.mxu1 (!%p165_p3), %v1763_v0  ;;  %vm1860_vm2 = vmor (!%p165_p3), %vm707_vm0, %vm708_vm1  ;;  %vm272_vm3 = vsmask.f32 (!%p165_p3), 3328  ;;  %vm273_vm4 = vsmask.f32 (!%p165_p3), 7440  ;;  %s1807_s25 = smov (!%p165_p3), 12  }
   0x8   : > { %1691 = vmatpush3.bf16.msra.mxu0 (!%p165_p3), %v1763_v0  ;;  %1731 = vmatpush3.bf16.msra.mxu1 (!%p165_p3), %v1763_v0  ;;  %vm1897_vm5 = vmor (!%p165_p3), %vm272_vm3, %vm273_vm4  ;;  %vm1165_vm6 = vcmask (!%p165_p3), 1041408   ;;  %vm1030_vm7 = vcmask (!%p165_p3), 97280   ;;  %vm1079_vm8 = vcmask (!%p165_p3), 195584   ;;  %vm1132_vm9 = vcmask (!%p165_p3), 293888  }
   0x9   : > { %1692 = vmatprep.subr.bf16.mxu0 (!%p165_p3), %v1764_v1  ;;  %1729 = vmatprep.subr.bf16.mxu1 (!%p165_p3), %v1764_v1 }
   0xc   : > { %1693 = vmatpush3.bf16.msra.mxu0 (!%p165_p3), %v1764_v1  ;;  %1732 = vmatpush3.bf16.msra.mxu1 (!%p165_p3), %v1764_v1 }
   0xe   : > { %s2427_s12 = smov (!%p201_p4, %s1796_s12), 1 }
   0xf   : > { %s1736_s20 = smul.u32 192, %s2427_s12  ;;  %s216_s30 = scalar_lea.vmem %s2416_s2, %s2427_s12 }
  0x10   : > { %s222_s6 = scalar_lea.vmem %s2417_s3, %s2427_s12 }
  0x11   : > { %s1858_s23 = scalar_lea.vmem %s2414_s0, %s1736_s20 }
  0x12   : > { %v1865_v3 = vld [vmem:[%s1858_s23] sm:$0xf]  ;;  %v1868_v4 = vld [vmem:[%s1858_s23 + $0x4] sm:$0xf]  ;;  %v226_v5 = vld [vmem:[%s1858_s23 + $0x8] sm:$0x1] }
  0x13   : > { %v1586_v6 = vrot.slane %v1865_v3, 9  ;;  %v712_v7 = vrot.slane %v1868_v4, 5  ;;  %v715_v8 = vrot.slane %v226_v5, 5  ;;  %v276_v9 = vshrl.u32 %v1865_v3, 16  ;;  %v1878_v14 = vld [vmem:[%s1858_s23 + $0xc] sm:$0xf] }
  0x14   : > { %v279_v10 = vshll.u32 %v1865_v3, 16  ;;  %v285_v11 = vshll.u32 %v1868_v4, 16  ;;  %v289_v12 = vshrl.u32 %v1868_v4, 16  ;;  %v295_v13 = vshll.u32 %v226_v5, 16  ;;  %v229_v18 = vld [vmem:[%s1858_s23 + $0x14] sm:$0x1] }
  0x15   : > { %v713_v15 = vsel %vm1860_vm2, %v1586_v6, %v712_v7  ;;  %v714_v16 = vrot.slane %v712_v7, 4  ;;  %v278_v17 = vrot.slane %v276_v9, 4  ;;  %v1587_v19 = vrot.slane %v1878_v14, 9  ;;  %v1885_v24 = vld [vmem:[%s1858_s23 + $0x10] sm:$0xf] }
  0x16   : > { %v281_v20 = vrot.slane %v279_v10, 5  ;;  %v287_v21 = vrot.slane %v285_v11, 5  ;;  %v291_v22 = vrot.slane %v289_v12, 4  ;;  %v297_v23 = vrot.slane %v295_v13, 5  ;;  %v1893_v33 = vld [vmem:[%s1858_s23 + $0x24] sm:$0xf] }
  0x17   : > { %v716_v25 = vsel %vm1860_vm2, %v714_v16, %v715_v8  ;;  %v719_v26 = vrot.slane %v1885_v24, 5  ;;  %v722_v27 = vrot.slane %v229_v18, 5  ;;  %v300_v28 = vshrl.u32 %v1878_v14, 16  ;;  %v1909_v46 = vld [vmem:[%s1858_s23 + $0x28] sm:$0xf] }
  0x18   : > { %v1634_v29 = vcombine.low %v713_v15, %v716_v25  ;;  %v282_v30 = vor.u32 %v281_v20, %v278_v17  ;;  %v292_v31 = vor.u32 %v291_v22, %v287_v21  ;;  %v303_v32 = vshll.u32 %v1878_v14, 16  ;;  %v1917_v52 = vld [vmem:[%s1858_s23 + $0x2c] sm:$0x1]  ;;  %v1920_v53 = vld [vmem:[%s1858_s23 + $0x18] sm:$0xf] }
  0x19   : > { %v720_v35 = vsel %vm1860_vm2, %v1587_v19, %v719_v26  ;;  %v721_v36 = vrot.slane %v719_v26, 4  ;;  %v302_v37 = vrot.slane %v300_v28, 4  ;;  %v309_v38 = vshll.u32 %v1885_v24, 16  ;;  %v1929_v0 = vld [vmem:[%s1858_s23 + $0x1c] sm:$0xf] }
  0x1a   : > { %998 = vrot.lane.b32.xlu1 %v1634_v29, %s1806_s24  ;;  %v283_v39 = vrot.slane %v282_v30, 4  ;;  %v293_v40 = vrot.slane %v292_v31, 4  ;;  %v305_v41 = vrot.slane %v303_v32, 5  ;;  %v313_v42 = vshrl.u32 %v1885_v24, 16  ;;  %v232_v10 = vld [vmem:[%s1858_s23 + $0x20] sm:$0x1] }
  0x1b   : > { %v723_v43 = vsel %vm1860_vm2, %v721_v36, %v722_v27  ;;  %v311_v44 = vrot.slane %v309_v38, 5  ;;  %v319_v45 = vshll.u32 %v229_v18, 16  ;;  %v348_v47 = vshrl.u32 %v1893_v33, 16 }
  0x1c   : > { %v288_v48 = vsel %vm1897_vm5, %v283_v39, %v287_v21  ;;  %v298_v49 = vsel %vm1897_vm5, %v293_v40, %v297_v23  ;;  %v1635_v50 = vcombine.low %v720_v35, %v723_v43  ;;  %v306_v51 = vor.u32 %v305_v41, %v302_v37  ;;  %v1943_v35 = vld [vmem:[%s1858_s23 + $0x3c] sm:$0xf]  ;;  %v1953_v40 = vld [vmem:[%s1858_s23 + $0x40] sm:$0xf] }
  0x1d   : > { %v1618_v54 = vcombine.low %v288_v48, %v298_v49  ;;  %v315_v55 = vrot.slane %v313_v42, 4  ;;  %v321_v56 = vrot.slane %v319_v45, 5  ;;  %v350_v57 = vrot.slane %v348_v47, 4 }
  0x1e   : > { %1000 = vrot.lane.b32.xlu1 %v1635_v50, %s1806_s24  ;;  %v307_v58 = vrot.slane %v306_v51, 4  ;;  %v351_v59 = vshll.u32 %v1893_v33, 16  ;;  %v357_v60 = vshll.u32 %v1909_v46, 16  ;;  %v361_v61 = vshrl.u32 %v1909_v46, 16  ;;  %v241_v51 = vld [vmem:[%s1858_s23 + $0x44] sm:$0x1] }
  0x1f   : > { %918 = vrot.lane.b32.xlu0 %v1618_v54, %s1807_s25  ;;  %v316_v62 = vor.u32 %v315_v55, %v311_v44  ;;  %v367_v63 = vshll.u32 %v1917_v52, 16  ;;  %v324_v1 = vshrl.u32 %v1920_v53, 16  ;;  %v327_v5 = vshll.u32 %v1920_v53, 16 }
  0x20   : > { %v312_v6 = vsel %vm1897_vm5, %v307_v58, %v311_v44  ;;  %v353_v7 = vrot.slane %v351_v59, 5  ;;  %v359_v8 = vrot.slane %v357_v60, 5  ;;  %v363_v9 = vrot.slane %v361_v61, 4  ;;  %v1971_v60 = vld [vmem:[%s1858_s23 + $0x30] sm:$0xf] }
  0x21   : > { %v317_v11 = vrot.slane %v316_v62, 4  ;;  %v369_v12 = vrot.slane %v367_v63, 5  ;;  %v326_v13 = vrot.slane %v324_v1, 4  ;;  %v329_v15 = vrot.slane %v327_v5, 5  ;;  %v1976_v5 = vld [vmem:[%s1858_s23 + $0x34] sm:$0xf] }
  0x22   : > { %v354_v16 = vor.u32 %v353_v7, %v350_v57  ;;  %v364_v17 = vor.u32 %v363_v9, %v359_v8  ;;  %v333_v18 = vshll.u32 %v1929_v0, 16  ;;  %v337_v19 = vshrl.u32 %v1929_v0, 16 }
  0x23   : > { %v322_v20 = vsel %vm1897_vm5, %v317_v11, %v321_v56  ;;  %v330_v21 = vor.u32 %v329_v15, %v326_v13  ;;  %v343_v22 = vshll.u32 %v232_v10, 16  ;;  %v1589_v23 = vrot.slane %v1893_v33, 9 }
  0x24   : > { %v1619_v25 = vcombine.low %v312_v6, %v322_v20  ;;  %v355_v26 = vrot.slane %v354_v16, 4  ;;  %v365_v27 = vrot.slane %v364_v17, 4  ;;  %v335_v28 = vrot.slane %v333_v18, 5 }
  0x25   : > { %v331_v29 = vrot.slane %v330_v21, 4  ;;  %v339_v30 = vrot.slane %v337_v19, 4  ;;  %v345_v31 = vrot.slane %v343_v22, 5  ;;  %v733_v32 = vrot.slane %v1909_v46, 5 }
  0x26   : > { %920 = vrot.lane.b32.xlu0 %v1619_v25, %s1807_s25  ;;  %v360_v36 = vsel %vm1897_vm5, %v355_v26, %v359_v8  ;;  %v370_v37 = vsel %vm1897_vm5, %v365_v27, %v369_v12  ;;  %v736_v38 = vrot.slane %v1917_v52, 5  ;;  %v1588_v39 = vrot.slane %v1920_v53, 9 }
  0x27   : > { %v1621_v41 = vcombine.low %v360_v36, %v370_v37  ;;  %v336_v42 = vsel %vm1897_vm5, %v331_v29, %v335_v28  ;;  %v340_v43 = vor.u32 %v339_v30, %v335_v28  ;;  %v734_v44 = vsel %vm1860_vm2, %v1589_v23, %v733_v32  ;;  %v1992_v36 = vld [vmem:[%s1858_s23 + $0x54] sm:$0xf] }
  0x28   : > { %v735_v45 = vrot.slane %v733_v32, 4  ;;  %v726_v47 = vrot.slane %v1929_v0, 5  ;;  %v729_v48 = vrot.slane %v232_v10, 5  ;;  %v396_v49 = vshrl.u32 %v1943_v35, 16  ;;  %v238_v10 = vld [vmem:[%s1858_s23 + $0x38] sm:$0x1] }
  0x29   : > { %924 = vrot.lane.b32.xlu1 %v1621_v41, %s1807_s25  ;;  %v341_v50 = vrot.slane %v340_v43, 4  ;;  %v399_v52 = vshll.u32 %v1943_v35, 16  ;;  %v405_v54 = vshll.u32 %v1953_v40, 16  ;;  %v409_v55 = vshrl.u32 %v1953_v40, 16 }
  0x2a   : > { %v737_v56 = vsel %vm1860_vm2, %v735_v45, %v736_v38  ;;  %v727_v57 = vsel %vm1860_vm2, %v1588_v39, %v726_v47  ;;  %v728_v58 = vrot.slane %v726_v47, 4  ;;  %v398_v59 = vrot.slane %v396_v49, 4 }
  0x2b   : > { %v346_v61 = vsel %vm1897_vm5, %v341_v50, %v345_v31  ;;  %v1637_v62 = vcombine.low %v734_v44, %v737_v56  ;;  %v401_v63 = vrot.slane %v399_v52, 5  ;;  %v407_v1 = vrot.slane %v405_v54, 5 }
  0x2c   : > { %v1620_v6 = vcombine.low %v336_v42, %v346_v61  ;;  %v730_v7 = vsel %vm1860_vm2, %v728_v58, %v729_v48  ;;  %v411_v8 = vrot.slane %v409_v55, 4  ;;  %v415_v9 = vshll.u32 %v241_v51, 16  ;;  %v1999_v42 = vld [vmem:[%s1858_s23 + $0x58] sm:$0xf]  ;;  %v247_v55 = vld [vmem:[%s1858_s23 + $0x5c] sm:$0x1] }
  0x2d   : > { %1004 = vrot.lane.b32.xlu1 %v1637_v62, %s1806_s24  ;;  %v1636_v11 = vcombine.low %v727_v57, %v730_v7  ;;  %v402_v12 = vor.u32 %v401_v63, %v398_v59  ;;  %v372_v13 = vshrl.u32 %v1971_v60, 16  ;;  %v375_v15 = vshll.u32 %v1971_v60, 16  ;;  %v2014_v58 = vld [vmem:[%s1858_s23 + $0x48] sm:$0xf] }
  0x2e   : > { %922 = vrot.lane.b32.xlu0 %v1620_v6, %s1807_s25  ;;  %v412_v16 = vor.u32 %v411_v8, %v407_v1  ;;  %v417_v17 = vrot.slane %v415_v9, 5  ;;  %v381_v18 = vshll.u32 %v1976_v5, 16  ;;  %v385_v19 = vshrl.u32 %v1976_v5, 16 }
  0x2f   : > { %v403_v20 = vrot.slane %v402_v12, 4  ;;  %v374_v21 = vrot.slane %v372_v13, 4  ;;  %v377_v22 = vrot.slane %v375_v15, 5  ;;  %v391_v23 = vshll.u32 %v238_v10, 16  ;;  %v244_v13 = vld [vmem:[%s1858_s23 + $0x50] sm:$0x1] }
  0x30   : > { %v413_v25 = vrot.slane %v412_v16, 4  ;;  %v383_v26 = vrot.slane %v381_v18, 5  ;;  %v387_v27 = vrot.slane %v385_v19, 4  ;;  %v1591_v28 = vrot.slane %v1943_v35, 9 }
  0x31   : > { %v408_v29 = vsel %vm1897_vm5, %v403_v20, %v407_v1  ;;  %v378_v30 = vor.u32 %v377_v22, %v374_v21  ;;  %v393_v31 = vrot.slane %v391_v23, 5  ;;  %v747_v32 = vrot.slane %v1953_v40, 5  ;;  %v2021_v1 = vld [vmem:[%s1858_s23 + $0x4c] sm:$0xf] }
  0x32   : > { %1002 = vrot.lane.b32.xlu0 %v1636_v11, %s1806_s24  ;;  %v418_v37 = vsel %vm1897_vm5, %v413_v25, %v417_v17  ;;  %v388_v38 = vor.u32 %v387_v27, %v383_v26  ;;  %v750_v39 = vrot.slane %v241_v51, 5  ;;  %v1590_v41 = vrot.slane %v1971_v60, 9 }
  0x33   : > { %v1623_v43 = vcombine.low %v408_v29, %v418_v37  ;;  %v379_v44 = vrot.slane %v378_v30, 4  ;;  %v748_v45 = vsel %vm1860_vm2, %v1591_v28, %v747_v32  ;;  %v749_v47 = vrot.slane %v747_v32, 4 }
  0x34   : > { %v389_v48 = vrot.slane %v388_v38, 4  ;;  %v740_v49 = vrot.slane %v1976_v5, 5  ;;  %v743_v50 = vrot.slane %v238_v10, 5  ;;  %v444_v52 = vshrl.u32 %v1992_v36, 16 }
  0x35   : > { %928 = vrot.lane.b32.xlu1 %v1623_v43, %s1807_s25  ;;  %v384_v51 = vsel %vm1897_vm5, %v379_v44, %v383_v26  ;;  %v751_v54 = vsel %vm1860_vm2, %v749_v47, %v750_v39  ;;  %v447_v56 = vshll.u32 %v1992_v36, 16  ;;  %v453_v57 = vshll.u32 %v1999_v42, 16  ;;  %v2039_v43 = vld [vmem:[%s1858_s23 + $0x6c] sm:$0xf] }
  0x36   : > { %v394_v59 = vsel %vm1897_vm5, %v389_v48, %v393_v31  ;;  %v1639_v61 = vcombine.low %v748_v45, %v751_v54  ;;  %v741_v62 = vsel %vm1860_vm2, %v1590_v41, %v740_v49  ;;  %v742_v63 = vrot.slane %v740_v49, 4 }
  0x37   : > { %v1622_v6 = vcombine.low %v384_v51, %v394_v59  ;;  %v446_v7 = vrot.slane %v444_v52, 4  ;;  %v449_v8 = vrot.slane %v447_v56, 5  ;;  %v455_v9 = vrot.slane %v453_v57, 5  ;;  %v2050_v57 = vld [vmem:[%s1858_s23 + $0x70] sm:$0xf] }
  0x38   : > { %v744_v10 = vsel %vm1860_vm2, %v742_v63, %v743_v50  ;;  %v457_v11 = vshrl.u32 %v1999_v42, 16  ;;  %v463_v12 = vshll.u32 %v247_v55, 16  ;;  %v420_v15 = vshrl.u32 %v2014_v58, 16  ;;  %v253_v59 = vld [vmem:[%s1858_s23 + $0x74] sm:$0x1] }
  0x39   : > { %926 = vrot.lane.b32.xlu0 %v1622_v6, %s1807_s25  ;;  %1008 = vrot.lane.b32.xlu1 %v1639_v61, %s1806_s24  ;;  %v1638_v16 = vcombine.low %v741_v62, %v744_v10  ;;  %v450_v17 = vor.u32 %v449_v8, %v446_v7  ;;  %v423_v18 = vshll.u32 %v2014_v58, 16  ;;  %v429_v19 = vshll.u32 %v2021_v1, 16  ;;  %v2059_v8 = vld [vmem:[%s1858_s23 + $0x60] sm:$0xf] }
  0x3a   : > { %v459_v20 = vrot.slane %v457_v11, 4  ;;  %v465_v21 = vrot.slane %v463_v12, 5  ;;  %v422_v22 = vrot.slane %v420_v15, 4  ;;  %v433_v23 = vshrl.u32 %v2021_v1, 16 }
  0x3b   : > { %v451_v25 = vrot.slane %v450_v17, 4  ;;  %v425_v26 = vrot.slane %v423_v18, 5  ;;  %v431_v27 = vrot.slane %v429_v19, 5  ;;  %v439_v28 = vshll.u32 %v244_v13, 16  ;;  %v2068_v18 = vld [vmem:[%s1858_s23 + $0x64] sm:$0xf] }
  0x3c   : > { %v460_v29 = vor.u32 %v459_v20, %v455_v9  ;;  %v435_v30 = vrot.slane %v433_v23, 4  ;;  %v1593_v31 = vrot.slane %v1992_v36, 9  ;;  %v761_v32 = vrot.slane %v1999_v42, 5 }
  0x3d   : > { %1006 = vrot.lane.b32.xlu0 %v1638_v16, %s1806_s24  ;;  %v456_v37 = vsel %vm1897_vm5, %v451_v25, %v455_v9  ;;  %v426_v38 = vor.u32 %v425_v26, %v422_v22  ;;  %v441_v39 = vrot.slane %v439_v28, 5  ;;  %v764_v41 = vrot.slane %v247_v55, 5 }
  0x3e   : > { %v461_v44 = vrot.slane %v460_v29, 4  ;;  %v436_v45 = vor.u32 %v435_v30, %v431_v27  ;;  %v762_v47 = vsel %vm1860_vm2, %v1593_v31, %v761_v32  ;;  %v763_v48 = vrot.slane %v761_v32, 4 }
  0x3f   : > { %v427_v49 = vrot.slane %v426_v38, 4  ;;  %v1592_v50 = vrot.slane %v2014_v58, 9  ;;  %v754_v52 = vrot.slane %v2021_v1, 5  ;;  %v757_v51 = vrot.slane %v244_v13, 5 }
  0x40   : > { %v466_v54 = vsel %vm1897_vm5, %v461_v44, %v465_v21  ;;  %v437_v56 = vrot.slane %v436_v45, 4  ;;  %v765_v55 = vsel %vm1860_vm2, %v763_v48, %v764_v41  ;;  %v492_v61 = vshrl.u32 %v2039_v43, 16  ;;  %v250_v21 = vld [vmem:[%s1858_s23 + $0x68] sm:$0x1] }
  0x41   : > { %v1625_v62 = vcombine.low %v456_v37, %v466_v54  ;;  %v432_v63 = vsel %vm1897_vm5, %v427_v49, %v431_v27  ;;  %v1641_v6 = vcombine.low %v762_v47, %v765_v55  ;;  %v755_v7 = vsel %vm1860_vm2, %v1592_v50, %v754_v52 }
  0x42   : > { %v442_v9 = vsel %vm1897_vm5, %v437_v56, %v441_v39  ;;  %v756_v10 = vrot.slane %v754_v52, 4  ;;  %v494_v11 = vrot.slane %v492_v61, 4  ;;  %v495_v12 = vshll.u32 %v2039_v43, 16 }
  0x43   : > { %932 = vrot.lane.b32.xlu1 %v1625_v62, %s1807_s25  ;;  %v1624_v13 = vcombine.low %v432_v63, %v442_v9  ;;  %v501_v15 = vshll.u32 %v2050_v57, 16  ;;  %v505_v16 = vshrl.u32 %v2050_v57, 16  ;;  %v511_v17 = vshll.u32 %v253_v59, 16  ;;  %v2091_v9 = vld [vmem:[%s1858_s23 + $0x84] sm:$0xf] }
  0x44   : > { %v758_v19 = vsel %vm1860_vm2, %v756_v10, %v757_v51  ;;  %v497_v20 = vrot.slane %v495_v12, 5  ;;  %v468_v22 = vshrl.u32 %v2059_v8, 16  ;;  %v471_v23 = vshll.u32 %v2059_v8, 16 }
  0x45   : > { %930 = vrot.lane.b32.xlu0 %v1624_v13, %s1807_s25  ;;  %v1640_v25 = vcombine.low %v755_v7, %v758_v19  ;;  %v503_v26 = vrot.slane %v501_v15, 5  ;;  %v507_v27 = vrot.slane %v505_v16, 4  ;;  %v513_v28 = vrot.slane %v511_v17, 5  ;;  %v259_v15 = vld [vmem:[%s1858_s23 + $0x8c] sm:$0x1] }
  0x46   : > { %v498_v29 = vor.u32 %v497_v20, %v494_v11  ;;  %v470_v30 = vrot.slane %v468_v22, 4  ;;  %v473_v31 = vrot.slane %v471_v23, 5  ;;  %v477_v32 = vshll.u32 %v2068_v18, 16  ;;  %v2102_v16 = vld [vmem:[%s1858_s23 + $0x78] sm:$0xf] }
  0x47   : > { %1012 = vrot.lane.b32.xlu1 %v1641_v6, %s1806_s24  ;;  %v508_v37 = vor.u32 %v507_v27, %v503_v26  ;;  %v481_v38 = vshrl.u32 %v2068_v18, 16  ;;  %v487_v39 = vshll.u32 %v250_v21, 16  ;;  %v1595_v41 = vrot.slane %v2039_v43, 9 }
  0x48   : > { %v499_v44 = vrot.slane %v498_v29, 4  ;;  %v474_v45 = vor.u32 %v473_v31, %v470_v30  ;;  %v479_v47 = vrot.slane %v477_v32, 5  ;;  %v775_v48 = vrot.slane %v2050_v57, 5  ;;  %v2116_v30 = vld [vmem:[%s1858_s23 + $0x7c] sm:$0xf] }
  0x49   : > { %1010 = vrot.lane.b32.xlu0 %v1640_v25, %s1806_s24  ;;  %v509_v49 = vrot.slane %v508_v37, 4  ;;  %v483_v50 = vrot.slane %v481_v38, 4  ;;  %v489_v52 = vrot.slane %v487_v39, 5  ;;  %v778_v51 = vrot.slane %v253_v59, 5  ;;  %v2094_v59 = vld [vmem:[%s1858_s23 + $0x88] sm:$0xf] }
  0x4a   : > { %v504_v54 = vsel %vm1897_vm5, %v499_v44, %v503_v26  ;;  %v475_v56 = vrot.slane %v474_v45, 4  ;;  %v776_v55 = vsel %vm1860_vm2, %v1595_v41, %v775_v48  ;;  %v777_v61 = vrot.slane %v775_v48, 4  ;;  %v256_v41 = vld [vmem:[%s1858_s23 + $0x80] sm:$0x1] }
  0x4b   : > { %v514_v62 = vsel %vm1897_vm5, %v509_v49, %v513_v28  ;;  %v484_v63 = vor.u32 %v483_v50, %v479_v47  ;;  %v1594_v6 = vrot.slane %v2059_v8, 9  ;;  %v768_v7 = vrot.slane %v2068_v18, 5 }
  0x4c   : > { %v1627_v10 = vcombine.low %v504_v54, %v514_v62  ;;  %v480_v11 = vsel %vm1897_vm5, %v475_v56, %v479_v47  ;;  %v779_v12 = vsel %vm1860_vm2, %v777_v61, %v778_v51  ;;  %v771_v13 = vrot.slane %v250_v21, 5 }
  0x4d   : > { %v485_v17 = vrot.slane %v484_v63, 4  ;;  %v1643_v19 = vcombine.low %v776_v55, %v779_v12  ;;  %v769_v20 = vsel %vm1860_vm2, %v1594_v6, %v768_v7  ;;  %v770_v22 = vrot.slane %v768_v7, 4 }
  0x4e   : > { %936 = vrot.lane.b32.xlu1 %v1627_v10, %s1807_s25  ;;  %v540_v23 = vshrl.u32 %v2091_v9, 16  ;;  %v543_v25 = vshll.u32 %v2091_v9, 16  ;;  %v549_v26 = vshll.u32 %v2094_v59, 16  ;;  %v553_v21 = vshrl.u32 %v2094_v59, 16 }
  0x4f   : > { %v490_v27 = vsel %vm1897_vm5, %v485_v17, %v489_v52  ;;  %v772_v28 = vsel %vm1860_vm2, %v770_v22, %v771_v13  ;;  %v559_v29 = vshll.u32 %v259_v15, 16  ;;  %v516_v31 = vshrl.u32 %v2102_v16, 16 }
  0x50   : > { %v1626_v32 = vcombine.low %v480_v11, %v490_v27  ;;  %v1642_v37 = vcombine.low %v769_v20, %v772_v28  ;;  %v542_v38 = vrot.slane %v540_v23, 4  ;;  %v545_v39 = vrot.slane %v543_v25, 5  ;;  %v2133_v23 = vld [vmem:[%s1858_s23 + $0x9c] sm:$0xf]  ;;  %v2140_v28 = vld [vmem:[%s1858_s23 + $0xa0] sm:$0xf] }
  0x51   : > { %v551_v44 = vrot.slane %v549_v26, 5  ;;  %v555_v45 = vrot.slane %v553_v21, 4  ;;  %v561_v47 = vrot.slane %v559_v29, 5  ;;  %v518_v48 = vrot.slane %v516_v31, 4 }
  0x52   : > { %934 = vrot.lane.b32.xlu0 %v1626_v32, %s1807_s25  ;;  %1016 = vrot.lane.b32.xlu1 %v1643_v19, %s1806_s24  ;;  %v546_v49 = vor.u32 %v545_v39, %v542_v38  ;;  %v519_v50 = vshll.u32 %v2102_v16, 16  ;;  %v525_v52 = vshll.u32 %v2116_v30, 16  ;;  %v529_v51 = vshrl.u32 %v2116_v30, 16 }
  0x53   : > { %v556_v54 = vor.u32 %v555_v45, %v551_v44  ;;  %v535_v56 = vshll.u32 %v256_v41, 16  ;;  %v1597_v55 = vrot.slane %v2091_v9, 9  ;;  %v789_v61 = vrot.slane %v2094_v59, 5 }
  0x54   : > { %v547_v62 = vrot.slane %v546_v49, 4  ;;  %v521_v63 = vrot.slane %v519_v50, 5  ;;  %v527_v6 = vrot.slane %v525_v52, 5  ;;  %v531_v7 = vrot.slane %v529_v51, 4  ;;  %v2156_v50 = vld [vmem:[%s1858_s23 + $0x90] sm:$0xf] }
  0x55   : > { %v557_v10 = vrot.slane %v556_v54, 4  ;;  %v537_v11 = vrot.slane %v535_v56, 5  ;;  %v790_v12 = vsel %vm1860_vm2, %v1597_v55, %v789_v61  ;;  %v791_v13 = vrot.slane %v789_v61, 4  ;;  %v2159_v52 = vld [vmem:[%s1858_s23 + $0x94] sm:$0xf] }
  0x56   : > { %1014 = vrot.lane.b32.xlu0 %v1642_v37, %s1806_s24  ;;  %v552_v17 = vsel %vm1897_vm5, %v547_v62, %v551_v44  ;;  %v522_v19 = vor.u32 %v521_v63, %v518_v48  ;;  %v532_v20 = vor.u32 %v531_v7, %v527_v6  ;;  %v792_v22 = vrot.slane %v259_v15, 5  ;;  %v265_v44 = vld [vmem:[%s1858_s23 + $0xa4] sm:$0x1]  ;;  %v262_v61 = vld [vmem:[%s1858_s23 + $0x98] sm:$0x1] }
  0x57   : > { %v562_v25 = vsel %vm1897_vm5, %v557_v10, %v561_v47  ;;  %v1596_v26 = vrot.slane %v2102_v16, 9  ;;  %v782_v21 = vrot.slane %v2116_v30, 5  ;;  %v785_v27 = vrot.slane %v256_v41, 5 }
  0x58   : > { %v1629_v29 = vcombine.low %v552_v17, %v562_v25  ;;  %v523_v31 = vrot.slane %v522_v19, 4  ;;  %v533_v32 = vrot.slane %v532_v20, 4  ;;  %v793_v15 = vsel %vm1860_vm2, %v791_v13, %v792_v22 }
  0x59   : > { %v1645_v37 = vcombine.low %v790_v12, %v793_v15  ;;  %v783_v38 = vsel %vm1860_vm2, %v1596_v26, %v782_v21  ;;  %v784_v39 = vrot.slane %v782_v21, 4  ;;  %v588_v45 = vshrl.u32 %v2133_v23, 16 }
  0x5a   : > { %940 = vrot.lane.b32.xlu1 %v1629_v29, %s1807_s25  ;;  %v528_v41 = vsel %vm1897_vm5, %v523_v31, %v527_v6  ;;  %v538_v47 = vsel %vm1897_vm5, %v533_v32, %v537_v11  ;;  %v591_v48 = vshll.u32 %v2133_v23, 16  ;;  %v597_v49 = vshll.u32 %v2140_v28, 16 }
  0x5b   : > { %v1628_v51 = vcombine.low %v528_v41, %v538_v47  ;;  %v786_v54 = vsel %vm1860_vm2, %v784_v39, %v785_v27  ;;  %v590_v56 = vrot.slane %v588_v45, 4  ;;  %v601_v55 = vshrl.u32 %v2140_v28, 16 }
  0x5c   : > { %v1644_v62 = vcombine.low %v783_v38, %v786_v54  ;;  %v593_v63 = vrot.slane %v591_v48, 5  ;;  %v599_v6 = vrot.slane %v597_v49, 5  ;;  %v607_v7 = vshll.u32 %v265_v44, 16 }
  0x5d   : > { %938 = vrot.lane.b32.xlu0 %v1628_v51, %s1807_s25  ;;  %v603_v10 = vrot.slane %v601_v55, 4  ;;  %v564_v11 = vshrl.u32 %v2156_v50, 16  ;;  %v567_v12 = vshll.u32 %v2156_v50, 16  ;;  %v573_v13 = vshll.u32 %v2159_v52, 16  ;;  %v2179_v51 = vld [vmem:[%s1858_s23 + $0xb4] sm:$0xf] }
  0x5e   : > { %1020 = vrot.lane.b32.xlu1 %v1645_v37, %s1806_s24  ;;  %v594_v17 = vor.u32 %v593_v63, %v590_v56  ;;  %v609_v19 = vrot.slane %v607_v7, 5  ;;  %v577_v20 = vshrl.u32 %v2159_v52, 16  ;;  %v583_v22 = vshll.u32 %v262_v61, 16 }
  0x5f   : > { %v604_v25 = vor.u32 %v603_v10, %v599_v6  ;;  %v566_v26 = vrot.slane %v564_v11, 4  ;;  %v569_v21 = vrot.slane %v567_v12, 5  ;;  %v575_v27 = vrot.slane %v573_v13, 5 }
  0x60   : > { %v595_v29 = vrot.slane %v594_v17, 4  ;;  %v579_v31 = vrot.slane %v577_v20, 4  ;;  %v585_v32 = vrot.slane %v583_v22, 5  ;;  %v1599_v15 = vrot.slane %v2133_v23, 9  ;;  %v271_v17 = vld [vmem:[%s1858_s23 + $0xbc] sm:$0x1] }
  0x61   : > { %1018 = vrot.lane.b32.xlu0 %v1644_v62, %s1806_s24  ;;  %v605_v38 = vrot.slane %v604_v25, 4  ;;  %v570_v37 = vor.u32 %v569_v21, %v566_v26  ;;  %v803_v39 = vrot.slane %v2140_v28, 5  ;;  %v806_v45 = vrot.slane %v265_v44, 5  ;;  %v2186_v44 = vld [vmem:[%s1858_s23 + $0xb8] sm:$0xf] }
  0x62   : > { %v600_v41 = vsel %vm1897_vm5, %v595_v29, %v599_v6  ;;  %v580_v47 = vor.u32 %v579_v31, %v575_v27  ;;  %v1598_v48 = vrot.slane %v2156_v50, 9  ;;  %v796_v49 = vrot.slane %v2159_v52, 5  ;;  %v2202_v21 = vld [vmem:[%s1858_s23 + $0xa8] sm:$0xf] }
  0x63   : > { %v610_v54 = vsel %vm1897_vm5, %v605_v38, %v609_v19  ;;  %v571_v56 = vrot.slane %v570_v37, 4  ;;  %v804_v55 = vsel %vm1860_vm2, %v1599_v15, %v803_v39  ;;  %v805_v62 = vrot.slane %v803_v39, 4  ;;  %v268_v38 = vld [vmem:[%s1858_s23 + $0xb0] sm:$0x1] }
  0x64   : > { %v1631_v63 = vcombine.low %v600_v41, %v610_v54  ;;  %v581_v6 = vrot.slane %v580_v47, 4  ;;  %v797_v7 = vsel %vm1860_vm2, %v1598_v48, %v796_v49  ;;  %v798_v10 = vrot.slane %v796_v49, 4 }
  0x65   : > { %v576_v11 = vsel %vm1897_vm5, %v571_v56, %v575_v27  ;;  %v807_v12 = vsel %vm1860_vm2, %v805_v62, %v806_v45  ;;  %v799_v13 = vrot.slane %v262_v61, 5  ;;  %v636_v19 = vshrl.u32 %v2179_v51, 16  ;;  %v2205_v27 = vld [vmem:[%s1858_s23 + $0xac] sm:$0xf] }
  0x66   : > { %944 = vrot.lane.b32.xlu1 %v1631_v63, %s1807_s25  ;;  %v586_v20 = vsel %vm1897_vm5, %v581_v6, %v585_v32  ;;  %v1647_v22 = vcombine.low %v804_v55, %v807_v12  ;;  %v639_v25 = vshll.u32 %v2179_v51, 16  ;;  %v645_v26 = vshll.u32 %v2186_v44, 16 }
  0x67   : > { %v1630_v29 = vcombine.low %v576_v11, %v586_v20  ;;  %v800_v61 = vsel %vm1860_vm2, %v798_v10, %v799_v13  ;;  %v638_v31 = vrot.slane %v636_v19, 4  ;;  %v649_v15 = vshrl.u32 %v2186_v44, 16 }
  0x68   : > { %v1646_v37 = vcombine.low %v797_v7, %v800_v61  ;;  %v641_v39 = vrot.slane %v639_v25, 5  ;;  %v647_v32 = vrot.slane %v645_v26, 5  ;;  %v655_v45 = vshll.u32 %v271_v17, 16 }
  0x69   : > { %942 = vrot.lane.b32.xlu0 %v1630_v29, %s1807_s25  ;;  %v651_v41 = vrot.slane %v649_v15, 4  ;;  %v612_v47 = vshrl.u32 %v2202_v21, 16  ;;  %v615_v48 = vshll.u32 %v2202_v21, 16  ;;  %v621_v49 = vshll.u32 %v2205_v27, 16 }
  0x6a   : > { %1024 = vrot.lane.b32.xlu1 %v1647_v22, %s1806_s24  ;;  %v642_v54 = vor.u32 %v641_v39, %v638_v31  ;;  %v657_v56 = vrot.slane %v655_v45, 5  ;;  %v625_v55 = vshrl.u32 %v2205_v27, 16  ;;  %v631_v62 = vshll.u32 %v268_v38, 16 }
  0x6b   : > { %v652_v63 = vor.u32 %v651_v41, %v647_v32  ;;  %v614_v6 = vrot.slane %v612_v47, 4  ;;  %v617_v7 = vrot.slane %v615_v48, 5  ;;  %v623_v10 = vrot.slane %v621_v49, 5 }
  0x6c   : > { %v643_v11 = vrot.slane %v642_v54, 4  ;;  %v627_v12 = vrot.slane %v625_v55, 4  ;;  %v633_v13 = vrot.slane %v631_v62, 5  ;;  %v1601_v19 = vrot.slane %v2179_v51, 9 }
  0x6d   : > { %1022 = vrot.lane.b32.xlu0 %v1646_v37, %s1806_s24  ;;  %v653_v20 = vrot.slane %v652_v63, 4  ;;  %v618_v25 = vor.u32 %v617_v7, %v614_v6  ;;  %v817_v22 = vrot.slane %v2186_v44, 5  ;;  %v820_v26 = vrot.slane %v271_v17, 5  ;;  %v1766_v17 = vld [vmem:[%s2415_s1 + $0x10] ss:$0 sps:$4 sm:$0x33]  }
  0x6e   : > { %v648_v29 = vsel %vm1897_vm5, %v643_v11, %v647_v32  ;;  %v628_v61 = vor.u32 %v627_v12, %v623_v10  ;;  %v1600_v31 = vrot.slane %v2202_v21, 9  ;;  %v810_v15 = vrot.slane %v2205_v27, 5  ;;  %1734 = vmatprep.subr.msk.bf16.mxu0 %vm1165_vm6, %v1766_v17  ;;  %1735 = vmatprep.subr.msk.bf16.mxu1 %vm1165_vm6, %v1766_v17 }
  0x6f   : > { %v658_v39 = vsel %vm1897_vm5, %v653_v20, %v657_v56  ;;  %v619_v45 = vrot.slane %v618_v25, 4  ;;  %v818_v37 = vsel %vm1860_vm2, %v1601_v19, %v817_v22  ;;  %v819_v41 = vrot.slane %v817_v22, 4 }
  0x70   : > { %v1633_v47 = vcombine.low %v648_v29, %v658_v39  ;;  %v629_v48 = vrot.slane %v628_v61, 4  ;;  %v812_v32 = vrot.slane %v810_v15, 4  ;;  %v813_v55 = vrot.slane %v268_v38, 5 }
  0x71   : > { %v624_v49 = vsel %vm1897_vm5, %v619_v45, %v623_v10  ;;  %v821_v54 = vsel %vm1860_vm2, %v819_v41, %v820_v26  ;;  %v811_v63 = vsel %vm1860_vm2, %v1600_v31, %v810_v15  ;;  %v1167_v10 = vsel %vm1165_vm6, %v1766_v17, 0 }
  0x72   : > { %948 = vrot.lane.b32.xlu1 %v1633_v47, %s1807_s25  ;;  %v634_v56 = vsel %vm1897_vm5, %v629_v48, %v633_v13  ;;  %v1649_v62 = vcombine.low %v818_v37, %v821_v54  ;;  %v814_v7 = vsel %vm1860_vm2, %v812_v32, %v813_v55  ;;  %1695 = vmatpush3.bf16.msra.mxu0 %v1167_v10 }
  0x73   : > { %v1632_v6 = vcombine.low %v624_v49, %v634_v56  ;;  %v1648_v38 = vcombine.low %v811_v63, %v814_v7  ;;  %v1608_v34 = vcombine.low %v2014_v58, %v2021_v1  ;;  %v1611_v11 = vcombine.low %v2039_v43, %v2050_v57  ;;  %1733 = vmatpush3.bf16.msra.mxu1 %v1167_v10 }
  0x74   : > { %v1610_v12 = vcombine.low %v2059_v8, %v2068_v18  ;;  %v1613_v2 = vcombine.low %v2091_v9, %v2094_v59  ;;  %v1612_v13 = vcombine.low %v2102_v16, %v2116_v30  ;;  %v1615_v19 = vcombine.low %v2133_v23, %v2140_v28 }
  0x75   : > { %946 = vrot.lane.b32.xlu0 %v1632_v6, %s1807_s25  ;;  %v1614_v58 = vcombine.low %v2156_v50, %v2159_v52  ;;  %v1617_v1 = vcombine.low %v2179_v51, %v2186_v44  ;;  %v1616_v20 = vcombine.low %v2202_v21, %v2205_v27  ;;  %v1602_v25 = vcombine.low %v1865_v3, %v1868_v4 }
  0x76   : > { %1028 = vrot.lane.b32.xlu1 %v1649_v62, %s1806_s24  ;;  %v1603_v31 = vcombine.low %v1878_v14, %v1885_v24  ;;  %v1605_v37 = vcombine.low %v1893_v33, %v1909_v46  ;;  %v1604_v41 = vcombine.low %v1920_v53, %v1929_v0  ;;  %v1607_v33 = vcombine.low %v1943_v35, %v1953_v40 }
  0x77   : > { %v1606_v46 = vcombine.low %v1971_v60, %v1976_v5  ;;  %v1609_v35 = vcombine.low %v1992_v36, %v1999_v42 }
  0x79   : > { %1026 = vrot.lane.b32.xlu0 %v1648_v38, %s1806_s24 }
  0x8c   : > { %v999_v22 = vpop.permute.xlu1 %998 }
  0x90   : > { %v1001_v15 = vpop.permute.xlu1 %1000 }
  0x91   : > { %v919_v26 = vpop.permute.xlu0 %918 }
  0x92   : > { %v1033_v29 = vsel %vm1030_vm7, %v1602_v25, %v919_v26 }
  0x93   : > { %v1081_v61 = vsel %vm1079_vm8, %v1033_v29, %v999_v22 }
  0x94   : > { %1696 = vmatprep.mubr.msk.bf16.mxu0 %vm1132_vm9, %v1081_v61 }
  0x98   : > { %v921_v39 = vpop.permute.xlu0 %920 }
  0x99   : > { %v1036_v45 = vsel %vm1030_vm7, %v1603_v31, %v921_v39 }
  0x9a   : > { %v1083_v3 = vsel %vm1079_vm8, %v1036_v45, %v1001_v15 }
  0x9b   : > { %1697 = vmatmul.mubr.msk.bf16.vlgmr.msra.gmra.mrb[0].mxu0 %vm1132_vm9, %v1083_v3  ;;  %v925_v4 = vpop.permute.xlu1 %924 }
  0x9c   : > { %v1042_v48 = vsel %vm1030_vm7, %v1605_v37, %v925_v4 }
  0x9f   : > { %v1005_v47 = vpop.permute.xlu1 %1004 }
  0xa0   : > { %v923_v17 = vpop.permute.xlu0 %922  ;;  %v1087_v49 = vsel %vm1079_vm8, %v1042_v48, %v1005_v47 }
  0xa1   : > { %v1039_v14 = vsel %vm1030_vm7, %v1604_v41, %v923_v17 }
  0xa4   : > { %v1003_v24 = vpop.permute.xlu0 %1002 }
  0xa5   : > { %v1085_v32 = vsel %vm1079_vm8, %v1039_v14, %v1003_v24 }
  0xa6   : > { %1700 = vmatprep.mubr.msk.bf16.mxu0 %vm1132_vm9, %v1085_v32 }
  0xa7   : > { %1701 = vmatmul.mubr.msk.bf16.gmra.mrb[4].mxu0 %vm1132_vm9, %v1087_v49  ;;  %v929_v54 = vpop.permute.xlu1 %928 }
  0xa8   : > { %v1048_v0 = vsel %vm1030_vm7, %v1607_v33, %v929_v54 }
  0xab   : > { %v927_v53 = vpop.permute.xlu0 %926  ;;  %v1009_v55 = vpop.permute.xlu1 %1008 }
  0xac   : > { %v1045_v56 = vsel %vm1030_vm7, %v1606_v46, %v927_v53  ;;  %v1091_v6 = vsel %vm1079_vm8, %v1048_v0, %v1009_v55 }
  0xaf   : > { %v1007_v62 = vpop.permute.xlu0 %1006 }
  0xb0   : > { %v1089_v63 = vsel %vm1079_vm8, %v1045_v56, %v1007_v62 }
  0xb1   : > { %1704 = vmatprep.mubr.msk.bf16.mxu0 %vm1132_vm9, %v1089_v63 }
  0xb2   : > { %1705 = vmatmul.mubr.msk.bf16.gmra.mrb[8].mxu0 %vm1132_vm9, %v1091_v6 }
  0xb5   : > { %v933_v7 = vpop.permute.xlu1 %932 }
  0xb6   : > { %v1054_v60 = vsel %vm1030_vm7, %v1609_v35, %v933_v7 }
  0xb7   : > { %v931_v40 = vpop.permute.xlu0 %930 }
  0xb8   : > { %v1051_v10 = vsel %vm1030_vm7, %v1608_v34, %v931_v40 }
  0xb9   : > { %v1013_v5 = vpop.permute.xlu1 %1012 }
  0xba   : > { %v1095_v22 = vsel %vm1079_vm8, %v1054_v60, %v1013_v5 }
  0xbb   : > { %v1011_v38 = vpop.permute.xlu0 %1010 }
  0xbc   : > { %v1093_v25 = vsel %vm1079_vm8, %v1051_v10, %v1011_v38 }
  0xbd   : > { %1708 = vmatprep.mubr.msk.bf16.mxu0 %vm1132_vm9, %v1093_v25 }
  0xbe   : > { %1709 = vmatmul.mubr.msk.bf16.gmra.mrb[12].mxu0 %vm1132_vm9, %v1095_v22 }
  0xc0   : > { %v937_v26 = vpop.permute.xlu1 %936 }
  0xc1   : > { %v1060_v36 = vsel %vm1030_vm7, %v1611_v11, %v937_v26 }
  0xc4   : > { %v935_v29 = vpop.permute.xlu0 %934  ;;  %v1017_v61 = vpop.permute.xlu1 %1016 }
  0xc5   : > { %v1057_v42 = vsel %vm1030_vm7, %v1610_v12, %v935_v29  ;;  %v1099_v15 = vsel %vm1079_vm8, %v1060_v36, %v1017_v61 }
  0xc8   : > { %v1015_v34 = vpop.permute.xlu0 %1014 }
  0xc9   : > { %v1097_v31 = vsel %vm1079_vm8, %v1057_v42, %v1015_v34 }
  0xca   : > { %1712 = vmatprep.mubr.msk.bf16.mxu1 %vm1132_vm9, %v1097_v31 }
  0xcb   : > { %1713 = vmatmul.mubr.msk.bf16.vlgmr.msra.gmra.mrb[0].mxu1 %vm1132_vm9, %v1099_v15 }
  0xcc   : > { %v941_v39 = vpop.permute.xlu1 %940 }
  0xcd   : > { %v1066_v43 = vsel %vm1030_vm7, %v1613_v2, %v941_v39 }
  0xcf   : > { %v939_v45 = vpop.permute.xlu0 %938 }
  0xd0   : > { %v1021_v57 = vpop.permute.xlu1 %1020  ;;  %v1063_v8 = vsel %vm1030_vm7, %v1612_v13, %v939_v45 }
  0xd1   : > { %v1103_v12 = vsel %vm1079_vm8, %v1066_v43, %v1021_v57 }
  0xd3   : > { %v1019_v18 = vpop.permute.xlu0 %1018 }
  0xd4   : > { %v1101_v11 = vsel %vm1079_vm8, %v1063_v8, %v1019_v18 }
  0xd5   : > { %1716 = vmatprep.mubr.msk.bf16.mxu1 %vm1132_vm9, %v1101_v11 }
  0xd6   : > { %1717 = vmatmul.mubr.msk.bf16.gmra.mrb[4].mxu1 %vm1132_vm9, %v1103_v12 }
  0xd8   : > { %v945_v3 = vpop.permute.xlu1 %944 }
  0xd9   : > { %v1072_v9 = vsel %vm1030_vm7, %v1615_v19, %v945_v3 }
  0xdb   : > { %v943_v4 = vpop.permute.xlu0 %942 }
  0xdc   : > { %v1025_v59 = vpop.permute.xlu1 %1024  ;;  %v1069_v16 = vsel %vm1030_vm7, %v1614_v58, %v943_v4 }
  0xdd   : > { %v1107_v13 = vsel %vm1079_vm8, %v1072_v9, %v1025_v59 }
  0xdf   : > { %v1023_v30 = vpop.permute.xlu0 %1022 }
  0xe0   : > { %v1105_v2 = vsel %vm1079_vm8, %v1069_v16, %v1023_v30 }
  0xe1   : > { %1720 = vmatprep.mubr.msk.bf16.mxu1 %vm1132_vm9, %v1105_v2 }
  0xe2   : > { %1721 = vmatmul.mubr.msk.bf16.gmra.mrb[8].mxu1 %vm1132_vm9, %v1107_v13 }
  0xe4   : > { %v949_v37 = vpop.permute.xlu1 %948 }
  0xe5   : > { %v1078_v23 = vsel %vm1030_vm7, %v1617_v1, %v949_v37 }
  0xe7   : > { %v947_v41 = vpop.permute.xlu0 %946 }
  0xe8   : > { %v1029_v28 = vpop.permute.xlu1 %1028  ;;  %v1075_v50 = vsel %vm1030_vm7, %v1616_v20, %v947_v41 }
  0xe9   : > { %v1111_v58 = vsel %vm1079_vm8, %v1078_v23, %v1029_v28 }
  0xeb   : > { %v1027_v52 = vpop.permute.xlu0 %1026 }
  0xec   : > { %v1109_v19 = vsel %vm1079_vm8, %v1075_v50, %v1027_v52 }
  0xed   : > { %1724 = vmatprep.mubr.msk.bf16.mxu1 %vm1132_vm9, %v1109_v19 }
  0xee   : > { %1725 = vmatmul.mubr.msk.bf16.gmra.mrb[12].mxu1 %vm1132_vm9, %v1111_v58 }
 0x16e   : > { %v2349_v17 = vpop.f32.mrb[0].mxu0 }
 0x16f   : > { %v2351_v51 = vpop.f32.mrb[1].mxu0 }
 0x170   : > { %v2353_v44 = vpop.f32.mrb[2].mxu0 }
 0x171   : > { %v2355_v1 = vpop.f32.mrb[3].mxu0 }
 0x172   : > { %v1330_v21 = vadd.f32 %v2355_v1, %v2351_v51 }
 0x174   : > { %v1331_v27 = vadd.f32 %v2349_v17, %v1330_v21 }
 0x176   : > { %v1332_v20 = vadd.f32 %v2353_v44, %v1331_v27 }
 0x17a   : > { %v2361_v47 = vpop.f32.mrb[4].mxu0 }
 0x17b   : > { %v2363_v48 = vpop.f32.mrb[5].mxu0 }
 0x17c   : > { %v1333_v14 = vadd.f32 %v1332_v20, %v2363_v48  ;;  %v2366_v24 = vpop.f32.mrb[6].mxu0 }
 0x17d   : > { %v2368_v32 = vpop.f32.mrb[7].mxu0 }
 0x17e   : > { %v1334_v49 = vadd.f32 %v1333_v14, %v2368_v32 }
 0x180   : > { %v1335_v54 = vadd.f32 %v2361_v47, %v1334_v49 }
 0x182   : > { %v1336_v33 = vadd.f32 %v2366_v24, %v1335_v54 }
 0x185   : > { %v2373_v46 = vpop.f32.mrb[8].mxu0 }
 0x186   : > { %v2375_v53 = vpop.f32.mrb[9].mxu0 }
 0x187   : > { %v1337_v0 = vadd.f32 %v1336_v33, %v2375_v53  ;;  %v2378_v55 = vpop.f32.mrb[10].mxu0 }
 0x188   : > { %v1238_v56 = vpop.f32.mrb[11].mxu0 }
 0x189   : > { %v1338_v62 = vadd.f32 %v1337_v0, %v1238_v56 }
 0x18b   : > { %v1339_v63 = vadd.f32 %v2373_v46, %v1338_v62 }
 0x18d   : > { %v1340_v6 = vadd.f32 %v2378_v55, %v1339_v63 }
 0x191   : > { %v2382_v7 = vpop.f32.mrb[12].mxu0 }
 0x192   : > { %v1251_v35 = vpop.f32.mrb[13].mxu0 }
 0x193   : > { %v1341_v40 = vadd.f32 %v1340_v6, %v1251_v35  ;;  %v1711_v60 = vpop.f32.mrb[14].mxu0 }
 0x194   : > { %v1254_v5 = vpop.f32.mrb[15].mxu0 }
 0x195   : > { %v1342_v10 = vadd.f32 %v1341_v40, %v1254_v5 }
 0x197   : > { %v1343_v38 = vadd.f32 %v2382_v7, %v1342_v10 }
 0x199   : > { %v1344_v25 = vadd.f32 %v1711_v60, %v1343_v38 }
 0x19e   : > { %v1714_v22 = vpop.f32.mrb[0].mxu1 }
 0x19f   : > { %v1267_v26 = vpop.f32.mrb[1].mxu1 }
 0x1a0   : > { %v1345_v29 = vadd.f32 %v1344_v25, %v1267_v26  ;;  %v1715_v61 = vpop.f32.mrb[2].mxu1 }
 0x1a1   : > { %v1270_v36 = vpop.f32.mrb[3].mxu1 }
 0x1a2   : > { %v1346_v42 = vadd.f32 %v1345_v29, %v1270_v36 }
 0x1a4   : > { %v1347_v34 = vadd.f32 %v1714_v22, %v1346_v42 }
 0x1a6   : > { %v1348_v31 = vadd.f32 %v1715_v61, %v1347_v34 }
 0x1a9   : > { %v1718_v15 = vpop.f32.mrb[4].mxu1 }
 0x1aa   : > { %v1283_v39 = vpop.f32.mrb[5].mxu1 }
 0x1ab   : > { %v1349_v45 = vadd.f32 %v1348_v31, %v1283_v39  ;;  %v1719_v43 = vpop.f32.mrb[6].mxu1 }
 0x1ac   : > { %v1286_v57 = vpop.f32.mrb[7].mxu1 }
 0x1ad   : > { %v1350_v8 = vadd.f32 %v1349_v45, %v1286_v57 }
 0x1af   : > { %v1351_v18 = vadd.f32 %v1718_v15, %v1350_v8 }
 0x1b1   : > { %v1352_v11 = vadd.f32 %v1719_v43, %v1351_v18 }
 0x1b5   : > { %v1722_v12 = vpop.f32.mrb[8].mxu1 }
 0x1b6   : > { %v1299_v3 = vpop.f32.mrb[9].mxu1 }
 0x1b7   : > { %v1353_v4 = vadd.f32 %v1352_v11, %v1299_v3  ;;  %v1723_v9 = vpop.f32.mrb[10].mxu1 }
 0x1b8   : > { %v1302_v59 = vpop.f32.mrb[11].mxu1 }
 0x1b9   : > { %v1354_v16 = vadd.f32 %v1353_v4, %v1302_v59 }
 0x1bb   : > { %v1355_v30 = vadd.f32 %v1722_v12, %v1354_v16 }
 0x1bd   : > { %v1356_v2 = vadd.f32 %v1723_v9, %v1355_v30 }
 0x1c1   : > { %v1726_v13 = vpop.f32.mrb[12].mxu1 }
 0x1c2   : > { %v1315_v37 = vpop.f32.mrb[13].mxu1 }
 0x1c3   : > { %v1357_v41 = vadd.f32 %v1356_v2, %v1315_v37  ;;  %v1727_v23 = vpop.f32.mrb[14].mxu1 }
 0x1c4   : > { %v1318_v28 = vpop.f32.mrb[15].mxu1 }
 0x1c5   : > { %v1358_v50 = vadd.f32 %v1357_v41, %v1318_v28 }
 0x1c7   : > { %v1359_v52 = vadd.f32 %v1726_v13, %v1358_v50 }
 0x1c9   : > { %v1360_v19 = vadd.f32 %v1727_v23, %v1359_v52 }
 0x1cb   : > { %v1361_v58 = vrot.slane %v1360_v19, 4 }
 0x1cd   : > { %v1362_v21 = vadd.f32 %v1361_v58, %v1360_v19 }
 0x1cf   : > { %v1363_v27 = vrot.slane %v1362_v21, 2 }
 0x1d1   : > { %v1364_v20 = vadd.f32 %v1363_v27, %v1362_v21 }
 0x1d3   : > { %v1365_v14 = vrot.slane %v1364_v20, 1 }
 0x1d5   : > { %v1366_v49 = vadd.f32 %v1365_v14, %v1364_v20 }
 0x1d7   : > { %v1367_v54 = vmul.f32 0.00390625, %v1366_v49  ;;  %1469 = vst [vmem:[%s216_s30] sm:$0x1] %v1366_v49 }
 0x1d9   : > { %v1368_v33 = vsub.f32 %v2351_v51, %v1367_v54  ;;  %v1369_v0 = vsub.f32 %v2355_v1, %v1367_v54  ;;  %v1370_v62 = vsub.f32 %v2349_v17, %v1367_v54  ;;  %v1371_v63 = vsub.f32 %v2353_v44, %v1367_v54 }
 0x1da   : > { %v1372_v6 = vsub.f32 %v2363_v48, %v1367_v54  ;;  %v1373_v40 = vsub.f32 %v2368_v32, %v1367_v54  ;;  %v1374_v10 = vsub.f32 %v2361_v47, %v1367_v54  ;;  %v1375_v38 = vsub.f32 %v2366_v24, %v1367_v54 }
 0x1db   : > { %v1376_v25 = vsub.f32 %v2375_v53, %v1367_v54  ;;  %v1377_v29 = vsub.f32 %v1238_v56, %v1367_v54  ;;  %v1378_v42 = vsub.f32 %v2373_v46, %v1367_v54  ;;  %v1379_v51 = vsub.f32 %v2378_v55, %v1367_v54 }
 0x1dc   : > { %v1380_v1 = vsub.f32 %v1251_v35, %v1367_v54  ;;  %v1381_v34 = vsub.f32 %v1254_v5, %v1367_v54  ;;  %v1382_v17 = vsub.f32 %v2382_v7, %v1367_v54  ;;  %v1383_v44 = vsub.f32 %v1711_v60, %v1367_v54 }
 0x1dd   : > { %v1384_v31 = vsub.f32 %v1267_v26, %v1367_v54  ;;  %v1385_v48 = vsub.f32 %v1270_v36, %v1367_v54  ;;  %v1386_v45 = vsub.f32 %v1714_v22, %v1367_v54  ;;  %v1387_v32 = vsub.f32 %v1715_v61, %v1367_v54 }
 0x1de   : > { %v1388_v8 = vsub.f32 %v1283_v39, %v1367_v54  ;;  %v1389_v47 = vsub.f32 %v1286_v57, %v1367_v54  ;;  %v1390_v18 = vsub.f32 %v1718_v15, %v1367_v54  ;;  %v1391_v24 = vsub.f32 %v1719_v43, %v1367_v54 }
 0x1df   : > { %v1392_v11 = vsub.f32 %v1299_v3, %v1367_v54  ;;  %v1393_v53 = vsub.f32 %v1302_v59, %v1367_v54  ;;  %v1394_v56 = vsub.f32 %v1722_v12, %v1367_v54  ;;  %v1395_v4 = vsub.f32 %v1723_v9, %v1367_v54 }
 0x1e0   : > { %v1396_v46 = vsub.f32 %v1315_v37, %v1367_v54  ;;  %v1397_v16 = vsub.f32 %v1318_v28, %v1367_v54  ;;  %v1398_v55 = vsub.f32 %v1726_v13, %v1367_v54  ;;  %v1399_v35 = vsub.f32 %v1727_v23, %v1367_v54 }
 0x1e1   : > { %v1400_v5 = vmul.f32 %v1368_v33, %v1368_v33  ;;  %v1401_v30 = vmul.f32 %v1369_v0, %v1369_v0  ;;  %v1402_v7 = vmul.f32 %v1370_v62, %v1370_v62  ;;  %v1403_v26 = vmul.f32 %v1371_v63, %v1371_v63 }
 0x1e2   : > { %v1404_v22 = vmul.f32 %v1372_v6, %v1372_v6  ;;  %v1405_v39 = vmul.f32 %v1373_v40, %v1373_v40  ;;  %v1406_v15 = vmul.f32 %v1374_v10, %v1374_v10  ;;  %v1407_v3 = vmul.f32 %v1375_v38, %v1375_v38 }
 0x1e3   : > { %v1432_v60 = vadd.f32 %v1401_v30, %v1400_v5  ;;  %v1408_v12 = vmul.f32 %v1376_v25, %v1376_v25  ;;  %v1409_v2 = vmul.f32 %v1377_v29, %v1377_v29  ;;  %v1410_v13 = vmul.f32 %v1378_v42, %v1378_v42 }
 0x1e4   : > { %v1411_v23 = vmul.f32 %v1379_v51, %v1379_v51  ;;  %v1412_v50 = vmul.f32 %v1380_v1, %v1380_v1  ;;  %v1413_v19 = vmul.f32 %v1381_v34, %v1381_v34  ;;  %v1414_v21 = vmul.f32 %v1382_v17, %v1382_v17 }
 0x1e5   : > { %v1433_v36 = vadd.f32 %v1432_v60, %v1402_v7  ;;  %v1415_v20 = vmul.f32 %v1383_v44, %v1383_v44  ;;  %v1416_v49 = vmul.f32 %v1384_v31, %v1384_v31  ;;  %v1417_v33 = vmul.f32 %v1385_v48, %v1385_v48 }
 0x1e6   : > { %v1418_v62 = vmul.f32 %v1386_v45, %v1386_v45  ;;  %v1419_v6 = vmul.f32 %v1387_v32, %v1387_v32  ;;  %v1420_v10 = vmul.f32 %v1388_v8, %v1388_v8  ;;  %v1421_v25 = vmul.f32 %v1389_v47, %v1389_v47 }
 0x1e7   : > { %v1434_v61 = vadd.f32 %v1433_v36, %v1403_v26  ;;  %v1422_v42 = vmul.f32 %v1390_v18, %v1390_v18  ;;  %v1423_v1 = vmul.f32 %v1391_v24, %v1391_v24  ;;  %v1424_v17 = vmul.f32 %v1392_v11, %v1392_v11 }
 0x1e8   : > { %v1425_v44 = vmul.f32 %v1393_v53, %v1393_v53  ;;  %v1426_v31 = vmul.f32 %v1394_v56, %v1394_v56  ;;  %v1427_v48 = vmul.f32 %v1395_v4, %v1395_v4  ;;  %v1428_v60 = vmul.f32 %v1396_v46, %v1396_v46 }
 0x1e9   : > { %v1435_v57 = vadd.f32 %v1434_v61, %v1404_v22  ;;  %v1429_v26 = vmul.f32 %v1397_v16, %v1397_v16  ;;  %v1430_v36 = vmul.f32 %v1398_v55, %v1398_v55  ;;  %v1431_v22 = vmul.f32 %v1399_v35, %v1399_v35 }
 0x1eb   : > { %v1436_v43 = vadd.f32 %v1435_v57, %v1405_v39 }
 0x1ed   : > { %v1437_v59 = vadd.f32 %v1436_v43, %v1406_v15 }
 0x1ef   : > { %v1438_v9 = vadd.f32 %v1437_v59, %v1407_v3 }
 0x1f1   : > { %v1439_v37 = vadd.f32 %v1438_v9, %v1408_v12 }
 0x1f3   : > { %v1440_v41 = vadd.f32 %v1439_v37, %v1409_v2 }
 0x1f5   : > { %v1441_v28 = vadd.f32 %v1440_v41, %v1410_v13 }
 0x1f7   : > { %v1442_v52 = vadd.f32 %v1441_v28, %v1411_v23 }
 0x1f9   : > { %v1443_v58 = vadd.f32 %v1442_v52, %v1412_v50 }
 0x1fb   : > { %v1444_v27 = vadd.f32 %v1443_v58, %v1413_v19 }
 0x1fd   : > { %v1445_v14 = vadd.f32 %v1444_v27, %v1414_v21 }
 0x1ff   : > { %v1446_v54 = vadd.f32 %v1445_v14, %v1415_v20 }
 0x201   : > { %v1447_v0 = vadd.f32 %v1446_v54, %v1416_v49 }
 0x203   : > { %v1448_v63 = vadd.f32 %v1447_v0, %v1417_v33 }
 0x205   : > { %v1449_v40 = vadd.f32 %v1448_v63, %v1418_v62 }
 0x207   : > { %v1450_v38 = vadd.f32 %v1449_v40, %v1419_v6 }
 0x209   : > { %v1451_v29 = vadd.f32 %v1450_v38, %v1420_v10 }
 0x20b   : > { %v1452_v51 = vadd.f32 %v1451_v29, %v1421_v25 }
 0x20d   : > { %v1453_v34 = vadd.f32 %v1452_v51, %v1422_v42 }
 0x20f   : > { %v1454_v5 = vadd.f32 %v1453_v34, %v1423_v1 }
 0x211   : > { %v1455_v30 = vadd.f32 %v1454_v5, %v1424_v17 }
 0x213   : > { %v1456_v7 = vadd.f32 %v1455_v30, %v1425_v44 }
 0x215   : > { %v1457_v45 = vadd.f32 %v1456_v7, %v1426_v31 }
 0x217   : > { %v1458_v32 = vadd.f32 %v1457_v45, %v1427_v48 }
 0x219   : > { %v1459_v8 = vadd.f32 %v1458_v32, %v1428_v60 }
 0x21b   : > { %v1460_v47 = vadd.f32 %v1459_v8, %v1429_v26 }
 0x21d   : > { %v1461_v18 = vadd.f32 %v1460_v47, %v1430_v36 }
 0x21f   : > { %v1462_v61 = vadd.f32 %v1461_v18, %v1431_v22 }
 0x221   : > { %v1463_v24 = vrot.slane %v1462_v61, 4 }
 0x223   : > { %v1464_v39 = vadd.f32 %v1463_v24, %v1462_v61 }
 0x225   : > { %v1465_v11 = vrot.slane %v1464_v39, 2 }
 0x227   : > { %v1466_v57 = vadd.f32 %v1465_v11, %v1464_v39 }
 0x229   : > { %v1467_v53 = vrot.slane %v1466_v57, 1 }
 0x22b   : > { %v1468_v56 = vadd.f32 %v1467_v53, %v1466_v57 }
 0x22d   : > { %1470 = vst [vmem:[%s222_s6] sm:$0x1] %v1468_v56 }
 0x22e PF: > { %s14_s14 = sadd.s32 1, %s1804_s14   ;;  %s2422_s12 = smov %s1800_s13 }
 0x22f   : > { %p11_p5 = scmp.ge.s32.totalorder %s14_s14, 4   ;;  %s2423_s13 = smov %s2425_s15 }
 0x231   :  { %13 = sbr.rel (!%p11_p5) target bundleno = 2 (0x2), region = 70 }

</bundles_post_ra>
